<compile_context>
chip_gen: v7x
topology: tpu7x:2x2x1
jax: 0.10.0
libtpu: 0.0.40
codegen_flags: <defaults>
</compile_context>

<pallas_src>
from functools import partial

import jax
import jax.numpy as jnp
from jax.experimental import pallas as pl
from jax.experimental.pallas import tpu as pltpu


# ----------------------------- in-kernel helpers -----------------------------

def _layernorm(x, g, b, eps=1e-5):
    x = x.astype(jnp.float32)
    mean = jnp.mean(x, axis=-1, keepdims=True)
    xc = x - mean
    var = jnp.mean(xc * xc, axis=-1, keepdims=True)
    return xc * jax.lax.rsqrt(var + eps) * g + b


def _quick_gelu(x):
    # QuickGELU: x * sigmoid(1.702 * x)  (original CLIP backbone activation)
    return x * (1.0 / (1.0 + jnp.exp(-1.702 * x)))


# --------------- fused stem: patch embed + pos + cls + ln_pre ----------------

def _stem_kernel(p_ref, w_ref, bias_ref, g_ref, b_ref, o_ref, *, batch):
    # One call for the whole batch. Row 0 of each image's patch matrix is zero,
    # so the cls token comes entirely from bias row 0 (= cls + pos[0]); patch
    # rows pick up pos[1:] from the remaining bias rows. ln_pre in the epilogue.
    for b in range(batch):                                        # static unroll, tiny B
        tok = jnp.dot(p_ref[b], w_ref[...], preferred_element_type=jnp.float32)
        tok = tok + bias_ref[...]
        o_ref[b] = _layernorm(tok, g_ref[...], b_ref[...]).astype(o_ref.dtype)


def stem_embed(patches, params):
    B, S, _ = patches.shape
    W = params["patch_w"].shape[1]
    return pl.pallas_call(
        partial(_stem_kernel, batch=B),
        out_shape=jax.ShapeDtypeStruct((B, S, W), jnp.float32),
    )(patches, params["patch_w"], params["tok_bias"],
      params["ln_pre_g"], params["ln_pre_b"])


# ----------------------- fused transformer block ------------------------------

def _block_kernel(h_ref, ln1_g, ln1_b, w_qkv, b_qkv, w_o, b_o,
                  ln2_g, ln2_b, w_fc1, b_fc1, w_fc2, b_fc2, o_ref, *, heads):
    W = w_o.shape[0]
    hd = W // heads
    batch = h_ref.shape[0]
    # TODO(synk): at real CLIP shapes cast MXU operands to bf16 (fp32 acc),
    # use head-batched einsums instead of the static unrolls, tile fc1/fc2 over
    # K with a VMEM accumulator, and split attention/MLP into two calls for the
    # v7x 64 MiB VMEM budget.
    for b in range(batch):                                        # static unroll, tiny B
        h = h_ref[b].astype(jnp.float32)                          # (S, W)

        # ---- multi-head self-attention (pre-LN residual) ----
        x1 = _layernorm(h, ln1_g[...], ln1_b[...])
        # fused lane-dense QKV projection; 1/sqrt(hd) pre-folded into the q slab
        qkv = jnp.dot(x1, w_qkv[...], preferred_element_type=jnp.float32) + b_qkv[...]
        head_out = []
        for hh in range(heads):                                   # static unroll
            q = qkv[:, hh * hd:(hh + 1) * hd]
            k = qkv[:, W + hh * hd:W + (hh + 1) * hd]
            v = qkv[:, 2 * W + hh * hd:2 * W + (hh + 1) * hd]
            s = jnp.einsum("qd,kd->qk", q, k, preferred_element_type=jnp.float32)
            s = s - jnp.max(s, axis=-1, keepdims=True)
            p = jnp.exp(s)
            # approx reciprocal lands on the EUP slot; swap to exact division
            # when doing tight allclose parity checks vs the PyTorch reference.
            p = p * pl.reciprocal(jnp.sum(p, axis=-1, keepdims=True), approx=True)
            head_out.append(jnp.dot(p, v, preferred_element_type=jnp.float32))
        attn = jnp.concatenate(head_out, axis=-1)                 # (S, W): heads on lanes
        h1 = h + jnp.dot(attn, w_o[...], preferred_element_type=jnp.float32) + b_o[...]

        # ---- MLP (pre-LN residual) ----
        x2 = _layernorm(h1, ln2_g[...], ln2_b[...])
        m = jnp.dot(x2, w_fc1[...], preferred_element_type=jnp.float32) + b_fc1[...]
        m = _quick_gelu(m)
        m = jnp.dot(m, w_fc2[...], preferred_element_type=jnp.float32) + b_fc2[...]
        o_ref[b] = (h1 + m).astype(o_ref.dtype)


def transformer_block(h, blk, *, heads):
    return pl.pallas_call(
        partial(_block_kernel, heads=heads),
        out_shape=jax.ShapeDtypeStruct(h.shape, jnp.float32),
        compiler_params=pltpu.CompilerParams(vmem_limit_bytes=64 * 1024 * 1024),
    )(h, blk["ln1_g"], blk["ln1_b"], blk["w_qkv"], blk["b_qkv"],
      blk["w_o"], blk["b_o"], blk["ln2_g"], blk["ln2_b"],
      blk["w_fc1"], blk["b_fc1"], blk["w_fc2"], blk["b_fc2"])


# ------------------- fused head: ln_post + (proj @ PCA) folded ----------------

def _head_kernel(h_ref, g_ref, b_ref, w_ref, bias_ref, o_ref, *, batch):
    # Reads only the cls row per image (no XLA slice of h between kernels).
    # Image projection and PCA pre-folded: w_head = proj @ comp.T,
    # b_head = -mean @ comp.T.
    for b in range(batch):                                        # static unroll, tiny B
        cls = h_ref[b][0:1, :]                                    # (1, W) cls token row
        x = _layernorm(cls, g_ref[...], b_ref[...])
        y = jnp.dot(x, w_ref[...], preferred_element_type=jnp.float32) + bias_ref[...]
        o_ref[b:b + 1, :] = y.astype(o_ref.dtype)


def clip_head(h, params):
    B = h.shape[0]
    P = params["w_head"].shape[1]
    return pl.pallas_call(
        partial(_head_kernel, batch=B),
        out_shape=jax.ShapeDtypeStruct((B, P), jnp.float32),
    )(h, params["ln_post_g"], params["ln_post_b"],
      params["w_head"], params["b_head"])


# --------------------------- parameter initialization -------------------------

def init_params(key, *, in_ch, patch, width, heads, layers, mlp_dim,
                embed_dim, n_pca, num_patches):
    std = 0.02
    head_dim = width // heads
    scale = 1.0 / (head_dim ** 0.5)
    keys = iter(jax.random.split(key, 8 + 8 * layers))

    def nrm(shape):
        return std * jax.random.normal(next(keys), shape, dtype=jnp.float32)

    cls = nrm((1, width))
    pos = nrm((num_patches + 1, width))

    # Exact fold of projection + PCA:
    #   (ln_post(cls) @ proj - mean) @ comp.T
    # = ln_post(cls) @ (proj @ comp.T) + (-mean @ comp.T)
    proj = nrm((width, embed_dim))                 # CLIP image projection (no bias)
    pca_mean = nrm((1, embed_dim))
    pca_comp_t = nrm((embed_dim, n_pca))           # sklearn components_.T

    params = {
        "patch_w": nrm((in_ch * patch * patch, width)),  # bias-free conv-as-matmul
        "tok_bias": jnp.concatenate([cls + pos[:1], pos[1:]], axis=0),  # (S, W)
        "ln_pre_g": jnp.ones((1, width), jnp.float32),
        "ln_pre_b": jnp.zeros((1, width), jnp.float32),
        "ln_post_g": jnp.ones((1, width), jnp.float32),
        "ln_post_b": jnp.zeros((1, width), jnp.float32),
        "w_head": proj @ pca_comp_t,                      # (W, n_pca)
        "b_head": -(pca_mean @ pca_comp_t),               # (1, n_pca)
        "blocks": [],
    }

    for _ in range(layers):
        # Fold 1/sqrt(head_dim) into the q slab. NOTE: when loading real CLIP
        # checkpoints the (nonzero) q bias must be scaled the same way, and
        # PyTorch out_proj.weight is stored (out, in) applied as x @ W.T, so it
        # must be transposed into this (in, out) layout.
        w_q = nrm((width, width)) * scale
        w_k = nrm((width, width))
        w_v = nrm((width, width))
        w_o = nrm((width, width))
        params["blocks"].append({
            "ln1_g": jnp.ones((1, width), jnp.float32),
            "ln1_b": jnp.zeros((1, width), jnp.float32),
            "w_qkv": jnp.concatenate([w_q, w_k, w_v], axis=1),   # (W, 3W) lane-dense
            "b_qkv": jnp.zeros((1, 3 * width), jnp.float32),
            "w_o": w_o,
            "b_o": jnp.zeros((1, width), jnp.float32),
            "ln2_g": jnp.ones((1, width), jnp.float32),
            "ln2_b": jnp.zeros((1, width), jnp.float32),
            "w_fc1": nrm((width, mlp_dim)),
            "b_fc1": jnp.zeros((1, mlp_dim), jnp.float32),
            "w_fc2": nrm((mlp_dim, width)),
            "b_fc2": jnp.zeros((1, width), jnp.float32),
        })
    return params


# ------------------------------- forward pass ---------------------------------

def clip_model_s2_forward(params, pixels, super_class, clazz, *, patch, heads):
    # TODO(synk): the original forward indexes its tensor input like a dict
    # (x['super_class']); labels are passed as separate arguments here instead.
    B, C, H, Wimg = pixels.shape
    gh, gw = H // patch, Wimg // patch
    n_patches = gh * gw

    # One-time XLA layout glue: NCHW -> (B, n_patches, C*p*p), plus a leading
    # zero row per image so the cls slot falls out of the same patch matmul
    # (its value is supplied entirely by tok_bias row 0 = cls + pos[0]).
    patches = pixels.reshape(B, C, gh, patch, gw, patch)
    patches = patches.transpose(0, 2, 4, 1, 3, 5).reshape(
        B, n_patches, C * patch * patch)
    patches = jnp.pad(patches, ((0, 0), (1, 0), (0, 0)))          # (B, S, C*p*p)

    h = stem_embed(patches, params)                  # patch embed + pos + cls + ln_pre
    for blk in params["blocks"]:
        h = transformer_block(h, blk, heads=heads)   # one fused call per layer
    feats = clip_head(h, params)                     # ln_post + folded proj/PCA
    return {"image_features": feats, "super_class": super_class, "class": clazz}


# ----------------------------------- main --------------------------------------

if __name__ == "__main__":
    # Small CLIP-ViT-like config.
    B, C, H, W = 2, 3, 16, 16
    PATCH = 8
    WIDTH = 64
    HEADS = 2
    LAYERS = 2
    MLP_DIM = 4 * WIDTH
    EMBED_DIM = 32
    N_PCA = 16
    NUM_PATCHES = (H // PATCH) * (W // PATCH)

    key = jax.random.PRNGKey(0)
    k_param, k_pix = jax.random.split(key)

    params = init_params(
        k_param, in_ch=C, patch=PATCH, width=WIDTH, heads=HEADS, layers=LAYERS,
        mlp_dim=MLP_DIM, embed_dim=EMBED_DIM, n_pca=N_PCA, num_patches=NUM_PATCHES,
    )

    pixels = jax.random.normal(k_pix, (B, C, H, W), dtype=jnp.float32)
    super_class = jnp.array([0, 1], dtype=jnp.int32)
    clazz = jnp.array([3, 7], dtype=jnp.int32)

    fwd = jax.jit(partial(clip_model_s2_forward, patch=PATCH, heads=HEADS))
    out = fwd(params, pixels, super_class, clazz)

    feats = jax.block_until_ready(out["image_features"])
    assert feats.shape == (B, N_PCA)
    assert bool(jnp.all(jnp.isfinite(feats)))
    print("KERNEL_OK")
</pallas_src>

<mosaic_0001>
module attributes {stable_mosaic.version = 11 : i64} {
  func.func @_stem_kernel(%arg0: memref<2x5x192xf32, #tpu.memory_space<vmem>>, %arg1: memref<192x64xf32, #tpu.memory_space<vmem>>, %arg2: memref<5x64xf32, #tpu.memory_space<vmem>>, %arg3: memref<1x64xf32, #tpu.memory_space<vmem>>, %arg4: memref<1x64xf32, #tpu.memory_space<vmem>>, %arg5: memref<2x5x64xf32, #tpu.memory_space<vmem>>) attributes {dimension_semantics = [], scalar_prefetch = 0 : i64, scratch_operands = 0 : i64, tpu.core_type = #tpu.core_type<tc>} {
    %c0 = arith.constant 0 : index
    %c0_0 = arith.constant 0 : index
    %c0_1 = arith.constant 0 : index
    %0 = vector.load %arg0[%c0, %c0_0, %c0_1] : memref<2x5x192xf32, #tpu.memory_space<vmem>>, vector<1x5x192xf32>
    %1 = vector.shape_cast %0 : vector<1x5x192xf32> to vector<5x192xf32>
    %c0_2 = arith.constant 0 : index
    %c0_3 = arith.constant 0 : index
    %2 = vector.load %arg1[%c0_2, %c0_3] : memref<192x64xf32, #tpu.memory_space<vmem>>, vector<192x64xf32>
    %cst = arith.constant dense<0.000000e+00> : vector<5x64xf32>
    %3 = tpu.matmul %1, %2, %cst {dimension_numbers = #tpu.dot_dimension_numbers<[1], [0], [0], [1], [0, 0, 1, 1], [], []>} : vector<5x192xf32>, vector<192x64xf32>, vector<5x64xf32> -> vector<5x64xf32>
    %c0_4 = arith.constant 0 : index
    %c0_5 = arith.constant 0 : index
    %4 = vector.load %arg2[%c0_4, %c0_5] : memref<5x64xf32, #tpu.memory_space<vmem>>, vector<5x64xf32>
    %5 = arith.addf %3, %4 : vector<5x64xf32>
    %c0_6 = arith.constant 0 : index
    %c0_7 = arith.constant 0 : index
    %6 = vector.load %arg3[%c0_6, %c0_7] : memref<1x64xf32, #tpu.memory_space<vmem>>, vector<1x64xf32>
    %c0_8 = arith.constant 0 : index
    %c0_9 = arith.constant 0 : index
    %7 = vector.load %arg4[%c0_8, %c0_9] : memref<1x64xf32, #tpu.memory_space<vmem>>, vector<1x64xf32>
    %cst_10 = arith.constant dense<0.000000e+00> : vector<5xf32>
    %8 = vector.multi_reduction <add>, %5, %cst_10 [1] : vector<5x64xf32> to vector<5xf32>
    %9 = vector.shape_cast %8 : vector<5xf32> to vector<5x1xf32>
    %cst_11 = arith.constant 6.400000e+01 : f32
    %10 = vector.broadcast %cst_11 : f32 to vector<5x1xf32>
    %11 = arith.divf %9, %10 : vector<5x1xf32>
    %12 = vector.broadcast %11 : vector<5x1xf32> to vector<5x64xf32>
    %13 = arith.subf %5, %12 : vector<5x64xf32>
    %14 = arith.mulf %13, %13 : vector<5x64xf32>
    %cst_12 = arith.constant dense<0.000000e+00> : vector<5xf32>
    %15 = vector.multi_reduction <add>, %14, %cst_12 [1] : vector<5x64xf32> to vector<5xf32>
    %16 = vector.shape_cast %15 : vector<5xf32> to vector<5x1xf32>
    %cst_13 = arith.constant 6.400000e+01 : f32
    %17 = vector.broadcast %cst_13 : f32 to vector<5x1xf32>
    %18 = arith.divf %16, %17 : vector<5x1xf32>
    %cst_14 = arith.constant 9.99999974E-6 : f32
    %19 = vector.broadcast %cst_14 : f32 to vector<5x1xf32>
    %20 = arith.addf %18, %19 : vector<5x1xf32>
    %21 = math.rsqrt %20 : vector<5x1xf32>
    %22 = vector.broadcast %21 : vector<5x1xf32> to vector<5x64xf32>
    %23 = arith.mulf %13, %22 : vector<5x64xf32>
    %24 = vector.broadcast %6 : vector<1x64xf32> to vector<5x64xf32>
    %25 = arith.mulf %23, %24 : vector<5x64xf32>
    %26 = vector.broadcast %7 : vector<1x64xf32> to vector<5x64xf32>
    %27 = arith.addf %25, %26 : vector<5x64xf32>
    %c0_15 = arith.constant 0 : index
    %c0_16 = arith.constant 0 : index
    %c0_17 = arith.constant 0 : index
    %28 = vector.load %arg5[%c0_15, %c0_16, %c0_17] : memref<2x5x64xf32, #tpu.memory_space<vmem>>, vector<1x5x64xf32>
    %29 = vector.shape_cast %28 : vector<1x5x64xf32> to vector<5x64xf32>
    %30 = vector.shape_cast %27 : vector<5x64xf32> to vector<1x5x64xf32>
    tpu.vector_store %arg5[%c0_15, %c0_16, %c0_17], %30 {strides = array<i32>} : memref<2x5x64xf32, #tpu.memory_space<vmem>>, vector<1x5x64xf32>,
    %c1 = arith.constant 1 : index
    %c0_18 = arith.constant 0 : index
    %c0_19 = arith.constant 0 : index
    %31 = vector.load %arg0[%c1, %c0_18, %c0_19] : memref<2x5x192xf32, #tpu.memory_space<vmem>>, vector<1x5x192xf32>
    %32 = vector.shape_cast %31 : vector<1x5x192xf32> to vector<5x192xf32>
    %c0_20 = arith.constant 0 : index
    %c0_21 = arith.constant 0 : index
    %33 = vector.load %arg1[%c0_20, %c0_21] : memref<192x64xf32, #tpu.memory_space<vmem>>, vector<192x64xf32>
    %cst_22 = arith.constant dense<0.000000e+00> : vector<5x64xf32>
    %34 = tpu.matmul %32, %33, %cst_22 {dimension_numbers = #tpu.dot_dimension_numbers<[1], [0], [0], [1], [0, 0, 1, 1], [], []>} : vector<5x192xf32>, vector<192x64xf32>, vector<5x64xf32> -> vector<5x64xf32>
    %c0_23 = arith.constant 0 : index
    %c0_24 = arith.constant 0 : index
    %35 = vector.load %arg2[%c0_23, %c0_24] : memref<5x64xf32, #tpu.memory_space<vmem>>, vector<5x64xf32>
    %36 = arith.addf %34, %35 : vector<5x64xf32>
    %c0_25 = arith.constant 0 : index
    %c0_26 = arith.constant 0 : index
    %37 = vector.load %arg3[%c0_25, %c0_26] : memref<1x64xf32, #tpu.memory_space<vmem>>, vector<1x64xf32>
    %c0_27 = arith.constant 0 : index
    %c0_28 = arith.constant 0 : index
    %38 = vector.load %arg4[%c0_27, %c0_28] : memref<1x64xf32, #tpu.memory_space<vmem>>, vector<1x64xf32>
    %cst_29 = arith.constant dense<0.000000e+00> : vector<5xf32>
    %39 = vector.multi_reduction <add>, %36, %cst_29 [1] : vector<5x64xf32> to vector<5xf32>
    %40 = vector.shape_cast %39 : vector<5xf32> to vector<5x1xf32>
    %cst_30 = arith.constant 6.400000e+01 : f32
    %41 = vector.broadcast %cst_30 : f32 to vector<5x1xf32>
    %42 = arith.divf %40, %41 : vector<5x1xf32>
    %43 = vector.broadcast %42 : vector<5x1xf32> to vector<5x64xf32>
    %44 = arith.subf %36, %43 : vector<5x64xf32>
    %45 = arith.mulf %44, %44 : vector<5x64xf32>
    %cst_31 = arith.constant dense<0.000000e+00> : vector<5xf32>
    %46 = vector.multi_reduction <add>, %45, %cst_31 [1] : vector<5x64xf32> to vector<5xf32>
    %47 = vector.shape_cast %46 : vector<5xf32> to vector<5x1xf32>
    %cst_32 = arith.constant 6.400000e+01 : f32
    %48 = vector.broadcast %cst_32 : f32 to vector<5x1xf32>
    %49 = arith.divf %47, %48 : vector<5x1xf32>
    %cst_33 = arith.constant 9.99999974E-6 : f32
    %50 = vector.broadcast %cst_33 : f32 to vector<5x1xf32>
    %51 = arith.addf %49, %50 : vector<5x1xf32>
    %52 = math.rsqrt %51 : vector<5x1xf32>
    %53 = vector.broadcast %52 : vector<5x1xf32> to vector<5x64xf32>
    %54 = arith.mulf %44, %53 : vector<5x64xf32>
    %55 = vector.broadcast %37 : vector<1x64xf32> to vector<5x64xf32>
    %56 = arith.mulf %54, %55 : vector<5x64xf32>
    %57 = vector.broadcast %38 : vector<1x64xf32> to vector<5x64xf32>
    %58 = arith.addf %56, %57 : vector<5x64xf32>
    %c1_34 = arith.constant 1 : index
    %c0_35 = arith.constant 0 : index
    %c0_36 = arith.constant 0 : index
    %59 = vector.load %arg5[%c1_34, %c0_35, %c0_36] : memref<2x5x64xf32, #tpu.memory_space<vmem>>, vector<1x5x64xf32>
    %60 = vector.shape_cast %59 : vector<1x5x64xf32> to vector<5x64xf32>
    %61 = vector.shape_cast %58 : vector<5x64xf32> to vector<1x5x64xf32>
    tpu.vector_store %arg5[%c1_34, %c0_35, %c0_36], %61 {strides = array<i32>} : memref<2x5x64xf32, #tpu.memory_space<vmem>>, vector<1x5x64xf32>,
    return
  }
}

module attributes {stable_mosaic.version = 11 : i64} {
  func.func @_block_kernel(%arg0: memref<2x5x64xf32, #tpu.memory_space<vmem>>, %arg1: memref<1x64xf32, #tpu.memory_space<vmem>>, %arg2: memref<1x64xf32, #tpu.memory_space<vmem>>, %arg3: memref<64x192xf32, #tpu.memory_space<vmem>>, %arg4: memref<1x192xf32, #tpu.memory_space<vmem>>, %arg5: memref<64x64xf32, #tpu.memory_space<vmem>>, %arg6: memref<1x64xf32, #tpu.memory_space<vmem>>, %arg7: memref<1x64xf32, #tpu.memory_space<vmem>>, %arg8: memref<1x64xf32, #tpu.memory_space<vmem>>, %arg9: memref<64x256xf32, #tpu.memory_space<vmem>>, %arg10: memref<1x256xf32, #tpu.memory_space<vmem>>, %arg11: memref<256x64xf32, #tpu.memory_space<vmem>>, %arg12: memref<1x64xf32, #tpu.memory_space<vmem>>, %arg13: memref<2x5x64xf32, #tpu.memory_space<vmem>>) attributes {dimension_semantics = [], scalar_prefetch = 0 : i64, scratch_operands = 0 : i64, tpu.core_type = #tpu.core_type<tc>} {
    %c0 = arith.constant 0 : index
    %c0_0 = arith.constant 0 : index
    %c0_1 = arith.constant 0 : index
    %0 = vector.load %arg0[%c0, %c0_0, %c0_1] : memref<2x5x64xf32, #tpu.memory_space<vmem>>, vector<1x5x64xf32>
    %1 = vector.shape_cast %0 : vector<1x5x64xf32> to vector<5x64xf32>
    %c0_2 = arith.constant 0 : index
    %c0_3 = arith.constant 0 : index
    %2 = vector.load %arg1[%c0_2, %c0_3] : memref<1x64xf32, #tpu.memory_space<vmem>>, vector<1x64xf32>
    %c0_4 = arith.constant 0 : index
    %c0_5 = arith.constant 0 : index
    %3 = vector.load %arg2[%c0_4, %c0_5] : memref<1x64xf32, #tpu.memory_space<vmem>>, vector<1x64xf32>
    %cst = arith.constant dense<0.000000e+00> : vector<5xf32>
    %4 = vector.multi_reduction <add>, %1, %cst [1] : vector<5x64xf32> to vector<5xf32>
    %5 = vector.shape_cast %4 : vector<5xf32> to vector<5x1xf32>
    %cst_6 = arith.constant 6.400000e+01 : f32
    %6 = vector.broadcast %cst_6 : f32 to vector<5x1xf32>
    %7 = arith.divf %5, %6 : vector<5x1xf32>
    %8 = vector.broadcast %7 : vector<5x1xf32> to vector<5x64xf32>
    %9 = arith.subf %1, %8 : vector<5x64xf32>
    %10 = arith.mulf %9, %9 : vector<5x64xf32>
    %cst_7 = arith.constant dense<0.000000e+00> : vector<5xf32>
    %11 = vector.multi_reduction <add>, %10, %cst_7 [1] : vector<5x64xf32> to vector<5xf32>
    %12 = vector.shape_cast %11 : vector<5xf32> to vector<5x1xf32>
    %cst_8 = arith.constant 6.400000e+01 : f32
    %13 = vector.broadcast %cst_8 : f32 to vector<5x1xf32>
    %14 = arith.divf %12, %13 : vector<5x1xf32>
    %cst_9 = arith.constant 9.99999974E-6 : f32
    %15 = vector.broadcast %cst_9 : f32 to vector<5x1xf32>
    %16 = arith.addf %14, %15 : vector<5x1xf32>
    %17 = math.rsqrt %16 : vector<5x1xf32>
    %18 = vector.broadcast %17 : vector<5x1xf32> to vector<5x64xf32>
    %19 = arith.mulf %9, %18 : vector<5x64xf32>
    %20 = vector.broadcast %2 : vector<1x64xf32> to vector<5x64xf32>
    %21 = arith.mulf %19, %20 : vector<5x64xf32>
    %22 = vector.broadcast %3 : vector<1x64xf32> to vector<5x64xf32>
    %23 = arith.addf %21, %22 : vector<5x64xf32>
    %c0_10 = arith.constant 0 : index
    %c0_11 = arith.constant 0 : index
    %24 = vector.load %arg3[%c0_10, %c0_11] : memref<64x192xf32, #tpu.memory_space<vmem>>, vector<64x192xf32>
    %cst_12 = arith.constant dense<0.000000e+00> : vector<5x192xf32>
    %25 = tpu.matmul %23, %24, %cst_12 {dimension_numbers = #tpu.dot_dimension_numbers<[1], [0], [0], [1], [0, 0, 1, 1], [], []>} : vector<5x64xf32>, vector<64x192xf32>, vector<5x192xf32> -> vector<5x192xf32>
    %c0_13 = arith.constant 0 : index
    %c0_14 = arith.constant 0 : index
    %26 = vector.load %arg4[%c0_13, %c0_14] : memref<1x192xf32, #tpu.memory_space<vmem>>, vector<1x192xf32>
    %27 = vector.broadcast %26 : vector<1x192xf32> to vector<5x192xf32>
    %28 = arith.addf %25, %27 : vector<5x192xf32>
    %29 = vector.extract_strided_slice %28 {offsets = [0, 0], sizes = [5, 32], strides = [1, 1]} : vector<5x192xf32> to vector<5x32xf32>
    %30 = vector.extract_strided_slice %28 {offsets = [0, 64], sizes = [5, 32], strides = [1, 1]} : vector<5x192xf32> to vector<5x32xf32>
    %31 = vector.extract_strided_slice %28 {offsets = [0, 128], sizes = [5, 32], strides = [1, 1]} : vector<5x192xf32> to vector<5x32xf32>
    "tpu.trace_start"() <{level = 10 : i32, message = "qd,kd->qk"}> : () -> ()
    %cst_15 = arith.constant dense<0.000000e+00> : vector<5x5xf32>
    %32 = tpu.matmul %29, %30, %cst_15 {dimension_numbers = #tpu.dot_dimension_numbers<[1], [1], [0], [0], [0, 0, 1, 0], [], []>} : vector<5x32xf32>, vector<5x32xf32>, vector<5x5xf32> -> vector<5x5xf32>
    "tpu.trace_stop"() : () -> ()
    %cst_16 = arith.constant dense<0xFF800000> : vector<5xf32>
    %33 = vector.multi_reduction <maximumf>, %32, %cst_16 [1] : vector<5x5xf32> to vector<5xf32>
    %34 = vector.shape_cast %33 : vector<5xf32> to vector<5x1xf32>
    %35 = vector.broadcast %34 : vector<5x1xf32> to vector<5x5xf32>
    %36 = arith.subf %32, %35 : vector<5x5xf32>
    %37 = math.exp %36 : vector<5x5xf32>
    %cst_17 = arith.constant dense<0.000000e+00> : vector<5xf32>
    %38 = vector.multi_reduction <add>, %37, %cst_17 [1] : vector<5x5xf32> to vector<5xf32>
    %39 = vector.shape_cast %38 : vector<5xf32> to vector<5x1xf32>
    %40 = tpu.reciprocal %39 {approx = true} : vector<5x1xf32> -> vector<5x1xf32>
    %41 = vector.broadcast %40 : vector<5x1xf32> to vector<5x5xf32>
    %42 = arith.mulf %37, %41 : vector<5x5xf32>
    %cst_18 = arith.constant dense<0.000000e+00> : vector<5x32xf32>
    %43 = tpu.matmul %42, %31, %cst_18 {dimension_numbers = #tpu.dot_dimension_numbers<[1], [0], [0], [1], [0, 0, 1, 1], [], []>} : vector<5x5xf32>, vector<5x32xf32>, vector<5x32xf32> -> vector<5x32xf32>
    %44 = vector.extract_strided_slice %28 {offsets = [0, 32], sizes = [5, 32], strides = [1, 1]} : vector<5x192xf32> to vector<5x32xf32>
    %45 = vector.extract_strided_slice %28 {offsets = [0, 96], sizes = [5, 32], strides = [1, 1]} : vector<5x192xf32> to vector<5x32xf32>
    %46 = vector.extract_strided_slice %28 {offsets = [0, 160], sizes = [5, 32], strides = [1, 1]} : vector<5x192xf32> to vector<5x32xf32>
    "tpu.trace_start"() <{level = 10 : i32, message = "qd,kd->qk"}> : () -> ()
    %cst_19 = arith.constant dense<0.000000e+00> : vector<5x5xf32>
    %47 = tpu.matmul %44, %45, %cst_19 {dimension_numbers = #tpu.dot_dimension_numbers<[1], [1], [0], [0], [0, 0, 1, 0], [], []>} : vector<5x32xf32>, vector<5x32xf32>, vector<5x5xf32> -> vector<5x5xf32>
    "tpu.trace_stop"() : () -> ()
    %cst_20 = arith.constant dense<0xFF800000> : vector<5xf32>
    %48 = vector.multi_reduction <maximumf>, %47, %cst_20 [1] : vector<5x5xf32> to vector<5xf32>
    %49 = vector.shape_cast %48 : vector<5xf32> to vector<5x1xf32>
    %50 = vector.broadcast %49 : vector<5x1xf32> to vector<5x5xf32>
    %51 = arith.subf %47, %50 : vector<5x5xf32>
    %52 = math.exp %51 : vector<5x5xf32>
    %cst_21 = arith.constant dense<0.000000e+00> : vector<5xf32>
    %53 = vector.multi_reduction <add>, %52, %cst_21 [1] : vector<5x5xf32> to vector<5xf32>
    %54 = vector.shape_cast %53 : vector<5xf32> to vector<5x1xf32>
    %55 = tpu.reciprocal %54 {approx = true} : vector<5x1xf32> -> vector<5x1xf32>
    %56 = vector.broadcast %55 : vector<5x1xf32> to vector<5x5xf32>
    %57 = arith.mulf %52, %56 : vector<5x5xf32>
    %cst_22 = arith.constant dense<0.000000e+00> : vector<5x32xf32>
    %58 = tpu.matmul %57, %46, %cst_22 {dimension_numbers = #tpu.dot_dimension_numbers<[1], [0], [0], [1], [0, 0, 1, 1], [], []>} : vector<5x5xf32>, vector<5x32xf32>, vector<5x32xf32> -> vector<5x32xf32>
    %59 = tpu.concatenate %43, %58 in 1 : vector<5x32xf32>, vector<5x32xf32> -> vector<5x64xf32>
    %c0_23 = arith.constant 0 : index
    %c0_24 = arith.constant 0 : index
    %60 = vector.load %arg5[%c0_23, %c0_24] : memref<64x64xf32, #tpu.memory_space<vmem>>, vector<64x64xf32>
    %cst_25 = arith.constant dense<0.000000e+00> : vector<5x64xf32>
    %61 = tpu.matmul %59, %60, %cst_25 {dimension_numbers = #tpu.dot_dimension_numbers<[1], [0], [0], [1], [0, 0, 1, 1], [], []>} : vector<5x64xf32>, vector<64x64xf32>, vector<5x64xf32> -> vector<5x64xf32>
    %62 = arith.addf %1, %61 : vector<5x64xf32>
    %c0_26 = arith.constant 0 : index
    %c0_27 = arith.constant 0 : index
    %63 = vector.load %arg6[%c0_26, %c0_27] : memref<1x64xf32, #tpu.memory_space<vmem>>, vector<1x64xf32>
    %64 = vector.broadcast %63 : vector<1x64xf32> to vector<5x64xf32>
    %65 = arith.addf %62, %64 : vector<5x64xf32>
    %c0_28 = arith.constant 0 : index
    %c0_29 = arith.constant 0 : index
    %66 = vector.load %arg7[%c0_28, %c0_29] : memref<1x64xf32, #tpu.memory_space<vmem>>, vector<1x64xf32>
    %c0_30 = arith.constant 0 : index
    %c0_31 = arith.constant 0 : index
    %67 = vector.load %arg8[%c0_30, %c0_31] : memref<1x64xf32, #tpu.memory_space<vmem>>, vector<1x64xf32>
    %cst_32 = arith.constant dense<0.000000e+00> : vector<5xf32>
    %68 = vector.multi_reduction <add>, %65, %cst_32 [1] : vector<5x64xf32> to vector<5xf32>
    %69 = vector.shape_cast %68 : vector<5xf32> to vector<5x1xf32>
    %cst_33 = arith.constant 6.400000e+01 : f32
    %70 = vector.broadcast %cst_33 : f32 to vector<5x1xf32>
    %71 = arith.divf %69, %70 : vector<5x1xf32>
    %72 = vector.broadcast %71 : vector<5x1xf32> to vector<5x64xf32>
    %73 = arith.subf %65, %72 : vector<5x64xf32>
    %74 = arith.mulf %73, %73 : vector<5x64xf32>
    %cst_34 = arith.constant dense<0.000000e+00> : vector<5xf32>
    %75 = vector.multi_reduction <add>, %74, %cst_34 [1] : vector<5x64xf32> to vector<5xf32>
    %76 = vector.shape_cast %75 : vector<5xf32> to vector<5x1xf32>
    %cst_35 = arith.constant 6.400000e+01 : f32
    %77 = vector.broadcast %cst_35 : f32 to vector<5x1xf32>
    %78 = arith.divf %76, %77 : vector<5x1xf32>
    %cst_36 = arith.constant 9.99999974E-6 : f32
    %79 = vector.broadcast %cst_36 : f32 to vector<5x1xf32>
    %80 = arith.addf %78, %79 : vector<5x1xf32>
    %81 = math.rsqrt %80 : vector<5x1xf32>
    %82 = vector.broadcast %81 : vector<5x1xf32> to vector<5x64xf32>
    %83 = arith.mulf %73, %82 : vector<5x64xf32>
    %84 = vector.broadcast %66 : vector<1x64xf32> to vector<5x64xf32>
    %85 = arith.mulf %83, %84 : vector<5x64xf32>
    %86 = vector.broadcast %67 : vector<1x64xf32> to vector<5x64xf32>
    %87 = arith.addf %85, %86 : vector<5x64xf32>
    %c0_37 = arith.constant 0 : index
    %c0_38 = arith.constant 0 : index
    %88 = vector.load %arg9[%c0_37, %c0_38] : memref<64x256xf32, #tpu.memory_space<vmem>>, vector<64x256xf32>
    %cst_39 = arith.constant dense<0.000000e+00> : vector<5x256xf32>
    %89 = tpu.matmul %87, %88, %cst_39 {dimension_numbers = #tpu.dot_dimension_numbers<[1], [0], [0], [1], [0, 0, 1, 1], [], []>} : vector<5x64xf32>, vector<64x256xf32>, vector<5x256xf32> -> vector<5x256xf32>
    %c0_40 = arith.constant 0 : index
    %c0_41 = arith.constant 0 : index
    %90 = vector.load %arg10[%c0_40, %c0_41] : memref<1x256xf32, #tpu.memory_space<vmem>>, vector<1x256xf32>
    %91 = vector.broadcast %90 : vector<1x256xf32> to vector<5x256xf32>
    %92 = arith.addf %89, %91 : vector<5x256xf32>
    %cst_42 = arith.constant -1.702000e+00 : f32
    %93 = vector.broadcast %cst_42 : f32 to vector<5x256xf32>
    %94 = arith.mulf %93, %92 : vector<5x256xf32>
    %95 = math.exp %94 : vector<5x256xf32>
    %cst_43 = arith.constant 1.000000e+00 : f32
    %96 = vector.broadcast %cst_43 : f32 to vector<5x256xf32>
    %97 = arith.addf %96, %95 : vector<5x256xf32>
    %cst_44 = arith.constant 1.000000e+00 : f32
    %98 = vector.broadcast %cst_44 : f32 to vector<5x256xf32>
    %99 = arith.divf %98, %97 : vector<5x256xf32>
    %100 = arith.mulf %92, %99 : vector<5x256xf32>
    %c0_45 = arith.constant 0 : index
    %c0_46 = arith.constant 0 : index
    %101 = vector.load %arg11[%c0_45, %c0_46] : memref<256x64xf32, #tpu.memory_space<vmem>>, vector<256x64xf32>
    %cst_47 = arith.constant dense<0.000000e+00> : vector<5x64xf32>
    %102 = tpu.matmul %100, %101, %cst_47 {dimension_numbers = #tpu.dot_dimension_numbers<[1], [0], [0], [1], [0, 0, 1, 1], [], []>} : vector<5x256xf32>, vector<256x64xf32>, vector<5x64xf32> -> vector<5x64xf32>
    %c0_48 = arith.constant 0 : index
    %c0_49 = arith.constant 0 : index
    %103 = vector.load %arg12[%c0_48, %c0_49] : memref<1x64xf32, #tpu.memory_space<vmem>>, vector<1x64xf32>
    %104 = vector.broadcast %103 : vector<1x64xf32> to vector<5x64xf32>
    %105 = arith.addf %102, %104 : vector<5x64xf32>
    %106 = arith.addf %65, %105 : vector<5x64xf32>
    %c0_50 = arith.constant 0 : index
    %c0_51 = arith.constant 0 : index
    %c0_52 = arith.constant 0 : index
    %107 = vector.load %arg13[%c0_50, %c0_51, %c0_52] : memref<2x5x64xf32, #tpu.memory_space<vmem>>, vector<1x5x64xf32>
    %108 = vector.shape_cast %107 : vector<1x5x64xf32> to vector<5x64xf32>
    %109 = vector.shape_cast %106 : vector<5x64xf32> to vector<1x5x64xf32>
    tpu.vector_store %arg13[%c0_50, %c0_51, %c0_52], %109 {strides = array<i32>} : memref<2x5x64xf32, #tpu.memory_space<vmem>>, vector<1x5x64xf32>,
    %c1 = arith.constant 1 : index
    %c0_53 = arith.constant 0 : index
    %c0_54 = arith.constant 0 : index
    %110 = vector.load %arg0[%c1, %c0_53, %c0_54] : memref<2x5x64xf32, #tpu.memory_space<vmem>>, vector<1x5x64xf32>
    %111 = vector.shape_cast %110 : vector<1x5x64xf32> to vector<5x64xf32>
    %c0_55 = arith.constant 0 : index
    %c0_56 = arith.constant 0 : index
    %112 = vector.load %arg1[%c0_55, %c0_56] : memref<1x64xf32, #tpu.memory_space<vmem>>, vector<1x64xf32>
    %c0_57 = arith.constant 0 : index
    %c0_58 = arith.constant 0 : index
    %113 = vector.load %arg2[%c0_57, %c0_58] : memref<1x64xf32, #tpu.memory_space<vmem>>, vector<1x64xf32>
    %cst_59 = arith.constant dense<0.000000e+00> : vector<5xf32>
    %114 = vector.multi_reduction <add>, %111, %cst_59 [1] : vector<5x64xf32> to vector<5xf32>
    %115 = vector.shape_cast %114 : vector<5xf32> to vector<5x1xf32>
    %cst_60 = arith.constant 6.400000e+01 : f32
    %116 = vector.broadcast %cst_60 : f32 to vector<5x1xf32>
    %117 = arith.divf %115, %116 : vector<5x1xf32>
    %118 = vector.broadcast %117 : vector<5x1xf32> to vector<5x64xf32>
    %119 = arith.subf %111, %118 : vector<5x64xf32>
    %120 = arith.mulf %119, %119 : vector<5x64xf32>
    %cst_61 = arith.constant dense<0.000000e+00> : vector<5xf32>
    %121 = vector.multi_reduction <add>, %120, %cst_61 [1] : vector<5x64xf32> to vector<5xf32>
    %122 = vector.shape_cast %121 : vector<5xf32> to vector<5x1xf32>
    %cst_62 = arith.constant 6.400000e+01 : f32
    %123 = vector.broadcast %cst_62 : f32 to vector<5x1xf32>
    %124 = arith.divf %122, %123 : vector<5x1xf32>
    %cst_63 = arith.constant 9.99999974E-6 : f32
    %125 = vector.broadcast %cst_63 : f32 to vector<5x1xf32>
    %126 = arith.addf %124, %125 : vector<5x1xf32>
    %127 = math.rsqrt %126 : vector<5x1xf32>
    %128 = vector.broadcast %127 : vector<5x1xf32> to vector<5x64xf32>
    %129 = arith.mulf %119, %128 : vector<5x64xf32>
    %130 = vector.broadcast %112 : vector<1x64xf32> to vector<5x64xf32>
    %131 = arith.mulf %129, %130 : vector<5x64xf32>
    %132 = vector.broadcast %113 : vector<1x64xf32> to vector<5x64xf32>
    %133 = arith.addf %131, %132 : vector<5x64xf32>
    %c0_64 = arith.constant 0 : index
    %c0_65 = arith.constant 0 : index
    %134 = vector.load %arg3[%c0_64, %c0_65] : memref<64x192xf32, #tpu.memory_space<vmem>>, vector<64x192xf32>
    %cst_66 = arith.constant dense<0.000000e+00> : vector<5x192xf32>
    %135 = tpu.matmul %133, %134, %cst_66 {dimension_numbers = #tpu.dot_dimension_numbers<[1], [0], [0], [1], [0, 0, 1, 1], [], []>} : vector<5x64xf32>, vector<64x192xf32>, vector<5x192xf32> -> vector<5x192xf32>
    %c0_67 = arith.constant 0 : index
    %c0_68 = arith.constant 0 : index
    %136 = vector.load %arg4[%c0_67, %c0_68] : memref<1x192xf32, #tpu.memory_space<vmem>>, vector<1x192xf32>
    %137 = vector.broadcast %136 : vector<1x192xf32> to vector<5x192xf32>
    %138 = arith.addf %135, %137 : vector<5x192xf32>
    %139 = vector.extract_strided_slice %138 {offsets = [0, 0], sizes = [5, 32], strides = [1, 1]} : vector<5x192xf32> to vector<5x32xf32>
    %140 = vector.extract_strided_slice %138 {offsets = [0, 64], sizes = [5, 32], strides = [1, 1]} : vector<5x192xf32> to vector<5x32xf32>
    %141 = vector.extract_strided_slice %138 {offsets = [0, 128], sizes = [5, 32], strides = [1, 1]} : vector<5x192xf32> to vector<5x32xf32>
    "tpu.trace_start"() <{level = 10 : i32, message = "qd,kd->qk"}> : () -> ()
    %cst_69 = arith.constant dense<0.000000e+00> : vector<5x5xf32>
    %142 = tpu.matmul %139, %140, %cst_69 {dimension_numbers = #tpu.dot_dimension_numbers<[1], [1], [0], [0], [0, 0, 1, 0], [], []>} : vector<5x32xf32>, vector<5x32xf32>, vector<5x5xf32> -> vector<5x5xf32>
    "tpu.trace_stop"() : () -> ()
    %cst_70 = arith.constant dense<0xFF800000> : vector<5xf32>
    %143 = vector.multi_reduction <maximumf>, %142, %cst_70 [1] : vector<5x5xf32> to vector<5xf32>
    %144 = vector.shape_cast %143 : vector<5xf32> to vector<5x1xf32>
    %145 = vector.broadcast %144 : vector<5x1xf32> to vector<5x5xf32>
    %146 = arith.subf %142, %145 : vector<5x5xf32>
    %147 = math.exp %146 : vector<5x5xf32>
    %cst_71 = arith.constant dense<0.000000e+00> : vector<5xf32>
    %148 = vector.multi_reduction <add>, %147, %cst_71 [1] : vector<5x5xf32> to vector<5xf32>
    %149 = vector.shape_cast %148 : vector<5xf32> to vector<5x1xf32>
    %150 = tpu.reciprocal %149 {approx = true} : vector<5x1xf32> -> vector<5x1xf32>
    %151 = vector.broadcast %150 : vector<5x1xf32> to vector<5x5xf32>
    %152 = arith.mulf %147, %151 : vector<5x5xf32>
    %cst_72 = arith.constant dense<0.000000e+00> : vector<5x32xf32>
    %153 = tpu.matmul %152, %141, %cst_72 {dimension_numbers = #tpu.dot_dimension_numbers<[1], [0], [0], [1], [0, 0, 1, 1], [], []>} : vector<5x5xf32>, vector<5x32xf32>, vector<5x32xf32> -> vector<5x32xf32>
    %154 = vector.extract_strided_slice %138 {offsets = [0, 32], sizes = [5, 32], strides = [1, 1]} : vector<5x192xf32> to vector<5x32xf32>
    %155 = vector.extract_strided_slice %138 {offsets = [0, 96], sizes = [5, 32], strides = [1, 1]} : vector<5x192xf32> to vector<5x32xf32>
    %156 = vector.extract_strided_slice %138 {offsets = [0, 160], sizes = [5, 32], strides = [1, 1]} : vector<5x192xf32> to vector<5x32xf32>
    "tpu.trace_start"() <{level = 10 : i32, message = "qd,kd->qk"}> : () -> ()
    %cst_73 = arith.constant dense<0.000000e+00> : vector<5x5xf32>
    %157 = tpu.matmul %154, %155, %cst_73 {dimension_numbers = #tpu.dot_dimension_numbers<[1], [1], [0], [0], [0, 0, 1, 0], [], []>} : vector<5x32xf32>, vector<5x32xf32>, vector<5x5xf32> -> vector<5x5xf32>
    "tpu.trace_stop"() : () -> ()
    %cst_74 = arith.constant dense<0xFF800000> : vector<5xf32>
    %158 = vector.multi_reduction <maximumf>, %157, %cst_74 [1] : vector<5x5xf32> to vector<5xf32>
    %159 = vector.shape_cast %158 : vector<5xf32> to vector<5x1xf32>
    %160 = vector.broadcast %159 : vector<5x1xf32> to vector<5x5xf32>
    %161 = arith.subf %157, %160 : vector<5x5xf32>
    %162 = math.exp %161 : vector<5x5xf32>
    %cst_75 = arith.constant dense<0.000000e+00> : vector<5xf32>
    %163 = vector.multi_reduction <add>, %162, %cst_75 [1] : vector<5x5xf32> to vector<5xf32>
    %164 = vector.shape_cast %163 : vector<5xf32> to vector<5x1xf32>
    %165 = tpu.reciprocal %164 {approx = true} : vector<5x1xf32> -> vector<5x1xf32>
    %166 = vector.broadcast %165 : vector<5x1xf32> to vector<5x5xf32>
    %167 = arith.mulf %162, %166 : vector<5x5xf32>
    %cst_76 = arith.constant dense<0.000000e+00> : vector<5x32xf32>
    %168 = tpu.matmul %167, %156, %cst_76 {dimension_numbers = #tpu.dot_dimension_numbers<[1], [0], [0], [1], [0, 0, 1, 1], [], []>} : vector<5x5xf32>, vector<5x32xf32>, vector<5x32xf32> -> vector<5x32xf32>
    %169 = tpu.concatenate %153, %168 in 1 : vector<5x32xf32>, vector<5x32xf32> -> vector<5x64xf32>
    %c0_77 = arith.constant 0 : index
    %c0_78 = arith.constant 0 : index
    %170 = vector.load %arg5[%c0_77, %c0_78] : memref<64x64xf32, #tpu.memory_space<vmem>>, vector<64x64xf32>
    %cst_79 = arith.constant dense<0.000000e+00> : vector<5x64xf32>
    %171 = tpu.matmul %169, %170, %cst_79 {dimension_numbers = #tpu.dot_dimension_numbers<[1], [0], [0], [1], [0, 0, 1, 1], [], []>} : vector<5x64xf32>, vector<64x64xf32>, vector<5x64xf32> -> vector<5x64xf32>
    %172 = arith.addf %111, %171 : vector<5x64xf32>
    %c0_80 = arith.constant 0 : index
    %c0_81 = arith.constant 0 : index
    %173 = vector.load %arg6[%c0_80, %c0_81] : memref<1x64xf32, #tpu.memory_space<vmem>>, vector<1x64xf32>
    %174 = vector.broadcast %173 : vector<1x64xf32> to vector<5x64xf32>
    %175 = arith.addf %172, %174 : vector<5x64xf32>
    %c0_82 = arith.constant 0 : index
    %c0_83 = arith.constant 0 : index
    %176 = vector.load %arg7[%c0_82, %c0_83] : memref<1x64xf32, #tpu.memory_space<vmem>>, vector<1x64xf32>
    %c0_84 = arith.constant 0 : index
    %c0_85 = arith.constant 0 : index
    %177 = vector.load %arg8[%c0_84, %c0_85] : memref<1x64xf32, #tpu.memory_space<vmem>>, vector<1x64xf32>
    %cst_86 = arith.constant dense<0.000000e+00> : vector<5xf32>
    %178 = vector.multi_reduction <add>, %175, %cst_86 [1] : vector<5x64xf32> to vector<5xf32>
    %179 = vector.shape_cast %178 : vector<5xf32> to vector<5x1xf32>
    %cst_87 = arith.constant 6.400000e+01 : f32
    %180 = vector.broadcast %cst_87 : f32 to vector<5x1xf32>
    %181 = arith.divf %179, %180 : vector<5x1xf32>
    %182 = vector.broadcast %181 : vector<5x1xf32> to vector<5x64xf32>
    %183 = arith.subf %175, %182 : vector<5x64xf32>
    %184 = arith.mulf %183, %183 : vector<5x64xf32>
    %cst_88 = arith.constant dense<0.000000e+00> : vector<5xf32>
    %185 = vector.multi_reduction <add>, %184, %cst_88 [1] : vector<5x64xf32> to vector<5xf32>
    %186 = vector.shape_cast %185 : vector<5xf32> to vector<5x1xf32>
    %cst_89 = arith.constant 6.400000e+01 : f32
    %187 = vector.broadcast %cst_89 : f32 to vector<5x1xf32>
    %188 = arith.divf %186, %187 : vector<5x1xf32>
    %cst_90 = arith.constant 9.99999974E-6 : f32
    %189 = vector.broadcast %cst_90 : f32 to vector<5x1xf32>
    %190 = arith.addf %188, %189 : vector<5x1xf32>
    %191 = math.rsqrt %190 : vector<5x1xf32>
    %192 = vector.broadcast %191 : vector<5x1xf32> to vector<5x64xf32>
    %193 = arith.mulf %183, %192 : vector<5x64xf32>
    %194 = vector.broadcast %176 : vector<1x64xf32> to vector<5x64xf32>
    %195 = arith.mulf %193, %194 : vector<5x64xf32>
    %196 = vector.broadcast %177 : vector<1x64xf32> to vector<5x64xf32>
    %197 = arith.addf %195, %196 : vector<5x64xf32>
    %c0_91 = arith.constant 0 : index
    %c0_92 = arith.constant 0 : index
    %198 = vector.load %arg9[%c0_91, %c0_92] : memref<64x256xf32, #tpu.memory_space<vmem>>, vector<64x256xf32>
    %cst_93 = arith.constant dense<0.000000e+00> : vector<5x256xf32>
    %199 = tpu.matmul %197, %198, %cst_93 {dimension_numbers = #tpu.dot_dimension_numbers<[1], [0], [0], [1], [0, 0, 1, 1], [], []>} : vector<5x64xf32>, vector<64x256xf32>, vector<5x256xf32> -> vector<5x256xf32>
    %c0_94 = arith.constant 0 : index
    %c0_95 = arith.constant 0 : index
    %200 = vector.load %arg10[%c0_94, %c0_95] : memref<1x256xf32, #tpu.memory_space<vmem>>, vector<1x256xf32>
    %201 = vector.broadcast %200 : vector<1x256xf32> to vector<5x256xf32>
    %202 = arith.addf %199, %201 : vector<5x256xf32>
    %cst_96 = arith.constant -1.702000e+00 : f32
    %203 = vector.broadcast %cst_96 : f32 to vector<5x256xf32>
    %204 = arith.mulf %203, %202 : vector<5x256xf32>
    %205 = math.exp %204 : vector<5x256xf32>
    %cst_97 = arith.constant 1.000000e+00 : f32
    %206 = vector.broadcast %cst_97 : f32 to vector<5x256xf32>
    %207 = arith.addf %206, %205 : vector<5x256xf32>
    %cst_98 = arith.constant 1.000000e+00 : f32
    %208 = vector.broadcast %cst_98 : f32 to vector<5x256xf32>
    %209 = arith.divf %208, %207 : vector<5x256xf32>
    %210 = arith.mulf %202, %209 : vector<5x256xf32>
    %c0_99 = arith.constant 0 : index
    %c0_100 = arith.constant 0 : index
    %211 = vector.load %arg11[%c0_99, %c0_100] : memref<256x64xf32, #tpu.memory_space<vmem>>, vector<256x64xf32>
    %cst_101 = arith.constant dense<0.000000e+00> : vector<5x64xf32>
    %212 = tpu.matmul %210, %211, %cst_101 {dimension_numbers = #tpu.dot_dimension_numbers<[1], [0], [0], [1], [0, 0, 1, 1], [], []>} : vector<5x256xf32>, vector<256x64xf32>, vector<5x64xf32> -> vector<5x64xf32>
    %c0_102 = arith.constant 0 : index
    %c0_103 = arith.constant 0 : index
    %213 = vector.load %arg12[%c0_102, %c0_103] : memref<1x64xf32, #tpu.memory_space<vmem>>, vector<1x64xf32>
    %214 = vector.broadcast %213 : vector<1x64xf32> to vector<5x64xf32>
    %215 = arith.addf %212, %214 : vector<5x64xf32>
    %216 = arith.addf %175, %215 : vector<5x64xf32>
    %c1_104 = arith.constant 1 : index
    %c0_105 = arith.constant 0 : index
    %c0_106 = arith.constant 0 : index
    %217 = vector.load %arg13[%c1_104, %c0_105, %c0_106] : memref<2x5x64xf32, #tpu.memory_space<vmem>>, vector<1x5x64xf32>
    %218 = vector.shape_cast %217 : vector<1x5x64xf32> to vector<5x64xf32>
    %219 = vector.shape_cast %216 : vector<5x64xf32> to vector<1x5x64xf32>
    tpu.vector_store %arg13[%c1_104, %c0_105, %c0_106], %219 {strides = array<i32>} : memref<2x5x64xf32, #tpu.memory_space<vmem>>, vector<1x5x64xf32>,
    return
  }
}

module attributes {stable_mosaic.version = 11 : i64} {
  func.func @_head_kernel(%arg0: memref<2x5x64xf32, #tpu.memory_space<vmem>>, %arg1: memref<1x64xf32, #tpu.memory_space<vmem>>, %arg2: memref<1x64xf32, #tpu.memory_space<vmem>>, %arg3: memref<64x16xf32, #tpu.memory_space<vmem>>, %arg4: memref<1x16xf32, #tpu.memory_space<vmem>>, %arg5: memref<2x16xf32, #tpu.memory_space<vmem>>) attributes {dimension_semantics = [], scalar_prefetch = 0 : i64, scratch_operands = 0 : i64, tpu.core_type = #tpu.core_type<tc>} {
    %c0 = arith.constant 0 : index
    %c0_0 = arith.constant 0 : index
    %c0_1 = arith.constant 0 : index
    %0 = vector.load %arg0[%c0, %c0_0, %c0_1] : memref<2x5x64xf32, #tpu.memory_space<vmem>>, vector<1x5x64xf32>
    %1 = vector.shape_cast %0 : vector<1x5x64xf32> to vector<5x64xf32>
    %2 = vector.extract_strided_slice %1 {offsets = [0, 0], sizes = [1, 64], strides = [1, 1]} : vector<5x64xf32> to vector<1x64xf32>
    %c0_2 = arith.constant 0 : index
    %c0_3 = arith.constant 0 : index
    %3 = vector.load %arg1[%c0_2, %c0_3] : memref<1x64xf32, #tpu.memory_space<vmem>>, vector<1x64xf32>
    %c0_4 = arith.constant 0 : index
    %c0_5 = arith.constant 0 : index
    %4 = vector.load %arg2[%c0_4, %c0_5] : memref<1x64xf32, #tpu.memory_space<vmem>>, vector<1x64xf32>
    %cst = arith.constant dense<0.000000e+00> : vector<1xf32>
    %5 = vector.multi_reduction <add>, %2, %cst [1] : vector<1x64xf32> to vector<1xf32>
    %6 = vector.shape_cast %5 : vector<1xf32> to vector<1x1xf32>
    %cst_6 = arith.constant 6.400000e+01 : f32
    %7 = vector.broadcast %cst_6 : f32 to vector<1x1xf32>
    %8 = arith.divf %6, %7 : vector<1x1xf32>
    %9 = vector.broadcast %8 : vector<1x1xf32> to vector<1x64xf32>
    %10 = arith.subf %2, %9 : vector<1x64xf32>
    %11 = arith.mulf %10, %10 : vector<1x64xf32>
    %cst_7 = arith.constant dense<0.000000e+00> : vector<1xf32>
    %12 = vector.multi_reduction <add>, %11, %cst_7 [1] : vector<1x64xf32> to vector<1xf32>
    %13 = vector.shape_cast %12 : vector<1xf32> to vector<1x1xf32>
    %cst_8 = arith.constant 6.400000e+01 : f32
    %14 = vector.broadcast %cst_8 : f32 to vector<1x1xf32>
    %15 = arith.divf %13, %14 : vector<1x1xf32>
    %cst_9 = arith.constant 9.99999974E-6 : f32
    %16 = vector.broadcast %cst_9 : f32 to vector<1x1xf32>
    %17 = arith.addf %15, %16 : vector<1x1xf32>
    %18 = math.rsqrt %17 : vector<1x1xf32>
    %19 = vector.broadcast %18 : vector<1x1xf32> to vector<1x64xf32>
    %20 = arith.mulf %10, %19 : vector<1x64xf32>
    %21 = arith.mulf %20, %3 : vector<1x64xf32>
    %22 = arith.addf %21, %4 : vector<1x64xf32>
    %c0_10 = arith.constant 0 : index
    %c0_11 = arith.constant 0 : index
    %23 = vector.load %arg3[%c0_10, %c0_11] : memref<64x16xf32, #tpu.memory_space<vmem>>, vector<64x16xf32>
    %cst_12 = arith.constant dense<0.000000e+00> : vector<1x16xf32>
    %24 = tpu.matmul %22, %23, %cst_12 {dimension_numbers = #tpu.dot_dimension_numbers<[1], [0], [0], [1], [0, 0, 1, 1], [], []>} : vector<1x64xf32>, vector<64x16xf32>, vector<1x16xf32> -> vector<1x16xf32>
    %c0_13 = arith.constant 0 : index
    %c0_14 = arith.constant 0 : index
    %25 = vector.load %arg4[%c0_13, %c0_14] : memref<1x16xf32, #tpu.memory_space<vmem>>, vector<1x16xf32>
    %26 = arith.addf %24, %25 : vector<1x16xf32>
    %c0_15 = arith.constant 0 : index
    %c0_16 = arith.constant 0 : index
    %27 = vector.load %arg5[%c0_15, %c0_16] : memref<2x16xf32, #tpu.memory_space<vmem>>, vector<1x16xf32>
    tpu.vector_store %arg5[%c0_15, %c0_16], %26 {strides = array<i32>} : memref<2x16xf32, #tpu.memory_space<vmem>>, vector<1x16xf32>,
    %c1 = arith.constant 1 : index
    %c0_17 = arith.constant 0 : index
    %c0_18 = arith.constant 0 : index
    %28 = vector.load %arg0[%c1, %c0_17, %c0_18] : memref<2x5x64xf32, #tpu.memory_space<vmem>>, vector<1x5x64xf32>
    %29 = vector.shape_cast %28 : vector<1x5x64xf32> to vector<5x64xf32>
    %30 = vector.extract_strided_slice %29 {offsets = [0, 0], sizes = [1, 64], strides = [1, 1]} : vector<5x64xf32> to vector<1x64xf32>
    %c0_19 = arith.constant 0 : index
    %c0_20 = arith.constant 0 : index
    %31 = vector.load %arg1[%c0_19, %c0_20] : memref<1x64xf32, #tpu.memory_space<vmem>>, vector<1x64xf32>
    %c0_21 = arith.constant 0 : index
    %c0_22 = arith.constant 0 : index
    %32 = vector.load %arg2[%c0_21, %c0_22] : memref<1x64xf32, #tpu.memory_space<vmem>>, vector<1x64xf32>
    %cst_23 = arith.constant dense<0.000000e+00> : vector<1xf32>
    %33 = vector.multi_reduction <add>, %30, %cst_23 [1] : vector<1x64xf32> to vector<1xf32>
    %34 = vector.shape_cast %33 : vector<1xf32> to vector<1x1xf32>
    %cst_24 = arith.constant 6.400000e+01 : f32
    %35 = vector.broadcast %cst_24 : f32 to vector<1x1xf32>
    %36 = arith.divf %34, %35 : vector<1x1xf32>
    %37 = vector.broadcast %36 : vector<1x1xf32> to vector<1x64xf32>
    %38 = arith.subf %30, %37 : vector<1x64xf32>
    %39 = arith.mulf %38, %38 : vector<1x64xf32>
    %cst_25 = arith.constant dense<0.000000e+00> : vector<1xf32>
    %40 = vector.multi_reduction <add>, %39, %cst_25 [1] : vector<1x64xf32> to vector<1xf32>
    %41 = vector.shape_cast %40 : vector<1xf32> to vector<1x1xf32>
    %cst_26 = arith.constant 6.400000e+01 : f32
    %42 = vector.broadcast %cst_26 : f32 to vector<1x1xf32>
    %43 = arith.divf %41, %42 : vector<1x1xf32>
    %cst_27 = arith.constant 9.99999974E-6 : f32
    %44 = vector.broadcast %cst_27 : f32 to vector<1x1xf32>
    %45 = arith.addf %43, %44 : vector<1x1xf32>
    %46 = math.rsqrt %45 : vector<1x1xf32>
    %47 = vector.broadcast %46 : vector<1x1xf32> to vector<1x64xf32>
    %48 = arith.mulf %38, %47 : vector<1x64xf32>
    %49 = arith.mulf %48, %31 : vector<1x64xf32>
    %50 = arith.addf %49, %32 : vector<1x64xf32>
    %c0_28 = arith.constant 0 : index
    %c0_29 = arith.constant 0 : index
    %51 = vector.load %arg3[%c0_28, %c0_29] : memref<64x16xf32, #tpu.memory_space<vmem>>, vector<64x16xf32>
    %cst_30 = arith.constant dense<0.000000e+00> : vector<1x16xf32>
    %52 = tpu.matmul %50, %51, %cst_30 {dimension_numbers = #tpu.dot_dimension_numbers<[1], [0], [0], [1], [0, 0, 1, 1], [], []>} : vector<1x64xf32>, vector<64x16xf32>, vector<1x16xf32> -> vector<1x16xf32>
    %c0_31 = arith.constant 0 : index
    %c0_32 = arith.constant 0 : index
    %53 = vector.load %arg4[%c0_31, %c0_32] : memref<1x16xf32, #tpu.memory_space<vmem>>, vector<1x16xf32>
    %54 = arith.addf %52, %53 : vector<1x16xf32>
    %c1_33 = arith.constant 1 : index
    %c0_34 = arith.constant 0 : index
    %55 = vector.load %arg5[%c1_33, %c0_34] : memref<2x16xf32, #tpu.memory_space<vmem>>, vector<1x16xf32>
    tpu.vector_store %arg5[%c1_33, %c0_34], %54 {strides = array<i32>} : memref<2x16xf32, #tpu.memory_space<vmem>>, vector<1x16xf32>,
    return
  }
}

</mosaic_0001>

<bundles_post_ra>
// kernel: clip_model_s2_forward.4
= control target key start
LH: loop header
LB: loop body
LE: loop exit
PB: predicated region body
PF: predicated region fallthrough
CT: control target
= control target key end

     0   :  { %v414_v3 = vmov 0.0|0.0   ;;  %vm48_vm0 = vcmask 523264   ;;  %s586_s0 = inlined_call_operand.vmem [shape: f32[2,5,192], index: 0, kind: input, shape index: {}]   ;;  %s587_s1 = inlined_call_operand.vmem [shape: f32[192,64], index: 1, kind: input, shape index: {}]   ;;  %s588_s2 = inlined_call_operand.vmem [shape: f32[5,64], index: 2, kind: input, shape index: {}]   ;;  %s589_s3 = inlined_call_operand.vmem [shape: f32[1,64], index: 3, kind: input, shape index: {}]   ;;  %s590_s4 = inlined_call_operand.vmem [shape: f32[1,64], index: 4, kind: input, shape index: {}]   ;;  %s591_s5 = inlined_call_operand.hbm [shape: f32[2,5,64], index: 5, kind: output, shape index: {}]  }
   0x1   :  { %v23_v0 = vld [vmem:[%s587_s1] sm:$0xff]  ;;  %v24_v1 = vld [vmem:[%s587_s1 + $0x8] sm:$0xff]  ;;  %v25_v2 = vld [vmem:[%s587_s1 + $0x10] sm:$0xff]  ;;  %310 = vmatprep.subr.bf16.mxu0 %v414_v3  ;;  %346 = vmatprep.subr.bf16.mxu1 %v414_v3 }
   0x2   :  { %v311_v4 = vpack.c.bf16 %v24_v1, %v23_v0  ;;  %v26_v5 = vld [vmem:[%s587_s1 + $0x18] sm:$0xff]  ;;  %v27_v7 = vld [vmem:[%s587_s1 + $0x20] sm:$0xff]  ;;  %v28_v8 = vld [vmem:[%s587_s1 + $0x28] sm:$0xff] }
   0x3   :  { %v314_v6 = vpack.c.bf16 %v26_v5, %v25_v2  ;;  %v317_v9 = vpack.c.bf16 %v28_v8, %v27_v7  ;;  %v29_v10 = vld [vmem:[%s587_s1 + $0x30] sm:$0xff]  ;;  %v30_v11 = vld [vmem:[%s587_s1 + $0x38] sm:$0xff]  ;;  %v22_v12 = vld [vmem:[%s586_s0 + $0x8] sm:$0x1f] }
   0x4   :  { %312 = vmatpush1.bf16.msra.mxu0 %v311_v4  ;;  %348 = vmatpush1.bf16.msra.mxu1 %v311_v4  ;;  %v306_v13 = vld [vmem:[%s586_s0 + $0x18] sm:$0x1f] }
   0x5   :  { %313 = vmatprep.subr.bf16.mxu0 %v414_v3  ;;  %349 = vmatprep.subr.bf16.mxu1 %v414_v3 }
   0x6   :  { %302 = vmatprep.mubr.msk.f32.mxu0 %vm48_vm0, %v22_v12  ;;  %307 = vmatprep.mubr.msk.f32.mxu1 %vm48_vm0, %v306_v13 }
   0x8   :  { %315 = vmatpush1.bf16.msra.mxu0 %v314_v6  ;;  %351 = vmatpush1.bf16.msra.mxu1 %v314_v6 }
   0x9   :  { %316 = vmatprep.subr.bf16.mxu0 %v414_v3  ;;  %352 = vmatprep.subr.bf16.mxu1 %v414_v3 }
   0xa   :  { %10 = vsyncpa [#allocation3], 0  ;;  %v320_v14 = vpack.c.bf16 %v30_v11, %v29_v10  ;;  %v31_v15 = vld [vmem:[%s587_s1 + $0x40] sm:$0xff]  ;;  %v32_v16 = vld [vmem:[%s587_s1 + $0x48] sm:$0xff]  ;;  %vm124_vm1 = vcmask 520192   ;;  %s415_s29 = smov [#allocation2]  }
   0xb   :  { %v323_v17 = vpack.c.bf16 %v32_v16, %v31_v15  ;;  %v33_v18 = vld [vmem:[%s587_s1 + $0x50] sm:$0xff]  ;;  %v34_v19 = vld [vmem:[%s587_s1 + $0x58] sm:$0xff]  ;;  %v35_v21 = vld [vmem:[%s587_s1 + $0x60] sm:$0xff]  ;;  %s291_s30 = sshll.u32 %s415_s29, 4  ;;  %s292_s30 = int_to_ptr.vmem [resolvable:$true] %s291_s30 }
   0xc   :  { %318 = vmatpush1.bf16.msra.mxu0 %v317_v9  ;;  %354 = vmatpush1.bf16.msra.mxu1 %v317_v9  ;;  %v326_v20 = vpack.c.bf16 %v34_v19, %v33_v18  ;;  %v36_v22 = vld [vmem:[%s587_s1 + $0x68] sm:$0xff]  ;;  %v37_v24 = vld [vmem:[%s587_s1 + $0x70] sm:$0xff]  ;;  %v38_v25 = vld [vmem:[%s587_s1 + $0x78] sm:$0xff]  ;;  %s390_s6 = scalar_lea.vmem %s292_s30, 256  ;;  %p395_p1 = scmp.lt.s32.totalorder %s292_s30, %s292_s30 }
   0xd   :  { %319 = vmatprep.subr.bf16.mxu0 %v414_v3  ;;  %355 = vmatprep.subr.bf16.mxu1 %v414_v3  ;;  %v329_v23 = vpack.c.bf16 %v36_v22, %v35_v21  ;;  %v332_v26 = vpack.c.bf16 %v38_v25, %v37_v24  ;;  %v39_v27 = vld [vmem:[%s587_s1 + $0x80] sm:$0xff]  ;;  %v40_v28 = vld [vmem:[%s587_s1 + $0x88] sm:$0xff]  ;;  %v41_v30 = vld [vmem:[%s587_s1 + $0x90] sm:$0xff]  ;;  %p391_p0 = scmp.ne.s32.totalorder %s292_s30, %s390_s6  ;;  %p396_p2 = scmp.lt.s32.totalorder %s390_s6, %s390_s6 }
   0xe   :  { %v335_v29 = vpack.c.bf16 %v40_v28, %v39_v27  ;;  %v42_v31 = vld [vmem:[%s587_s1 + $0x98] sm:$0xff]  ;;  %v43_v33 = vld [vmem:[%s587_s1 + $0xa0] sm:$0xff]  ;;  %v44_v34 = vld [vmem:[%s587_s1 + $0xa8] sm:$0xff] }
   0xf   :  { %v338_v32 = vpack.c.bf16 %v42_v31, %v41_v30  ;;  %v341_v35 = vpack.c.bf16 %v44_v34, %v43_v33  ;;  %v45_v36 = vld [vmem:[%s587_s1 + $0xb0] sm:$0xff]  ;;  %v46_v37 = vld [vmem:[%s587_s1 + $0xb8] sm:$0xff]  ;;  %v21_v39 = vld [vmem:[%s586_s0] sm:$0x1f]  ;;  %p397_p3 = por %p396_p2, %p395_p1 }
  0x10   :  { %321 = vmatpush1.bf16.msra.mxu0 %v320_v14  ;;  %357 = vmatpush1.bf16.msra.mxu1 %v320_v14  ;;  %v344_v38 = vpack.c.bf16 %v46_v37, %v45_v36  ;;  %v305_v40 = vld [vmem:[%s586_s0 + $0x10] sm:$0x1f]  ;;  %v47_v41 = vld [vmem:[%s588_s2] sm:$0x1f] }
  0x11   :  { %322 = vmatprep.subr.bf16.mxu0 %v414_v3  ;;  %358 = vmatprep.subr.bf16.mxu1 %v414_v3  ;;  %v181_v42 = vld [vmem:[%s588_s2] sm:$0x1f]  ;;  %p398_p4 = pnand %p397_p3, %p391_p0 }
  0x12   :  { %v303_v4 = vld [vmem:[%s589_s3] ss:$0 sm:$0xff] }
  0x13   :  { %v304_v6 = vld [vmem:[%s590_s4] ss:$0 sm:$0xff] }
  0x14   :  { %324 = vmatpush1.bf16.msra.mxu0 %v323_v17  ;;  %360 = vmatpush1.bf16.msra.mxu1 %v323_v17 }
  0x15   :  { %325 = vmatprep.subr.bf16.mxu0 %v414_v3  ;;  %361 = vmatprep.subr.bf16.mxu1 %v414_v3 }
  0x18   :  { %327 = vmatpush1.bf16.msra.mxu0 %v326_v20  ;;  %363 = vmatpush1.bf16.msra.mxu1 %v326_v20 }
  0x19   :  { %328 = vmatprep.subr.bf16.mxu0 %v414_v3  ;;  %364 = vmatprep.subr.bf16.mxu1 %v414_v3 }
  0x1c   :  { %330 = vmatpush1.bf16.msra.mxu0 %v329_v23  ;;  %366 = vmatpush1.bf16.msra.mxu1 %v329_v23 }
  0x1d   :  { %331 = vmatprep.subr.bf16.mxu0 %v414_v3  ;;  %367 = vmatprep.subr.bf16.mxu1 %v414_v3 }
  0x20   :  { %333 = vmatpush1.bf16.msra.mxu0 %v332_v26  ;;  %369 = vmatpush1.bf16.msra.mxu1 %v332_v26 }
  0x21   :  { %334 = vmatprep.subr.bf16.mxu0 %v414_v3  ;;  %370 = vmatprep.subr.bf16.mxu1 %v414_v3 }
  0x24   :  { %336 = vmatpush1.bf16.msra.mxu0 %v335_v29  ;;  %372 = vmatpush1.bf16.msra.mxu1 %v335_v29 }
  0x25   :  { %337 = vmatprep.subr.bf16.mxu0 %v414_v3  ;;  %373 = vmatprep.subr.bf16.mxu1 %v414_v3 }
  0x28   :  { %339 = vmatpush1.bf16.msra.mxu0 %v338_v32  ;;  %375 = vmatpush1.bf16.msra.mxu1 %v338_v32 }
  0x29   :  { %340 = vmatprep.subr.bf16.mxu0 %v414_v3  ;;  %376 = vmatprep.subr.bf16.mxu1 %v414_v3 }
  0x2c   :  { %342 = vmatpush1.bf16.msra.mxu0 %v341_v35  ;;  %378 = vmatpush1.bf16.msra.mxu1 %v341_v35 }
  0x2d   :  { %343 = vmatprep.subr.bf16.mxu0 %v414_v3  ;;  %379 = vmatprep.subr.bf16.mxu1 %v414_v3 }
  0x30   :  { %345 = vmatpush1.bf16.msra.mxu0 %v344_v38  ;;  %381 = vmatpush1.bf16.msra.mxu1 %v344_v38 }
  0x33   :  { %117 = vmatmul.mubr.f32.vlgmr.msra.gmra.mrb[0].mxu0 %v21_v39  ;;  %250 = vmatmul.mubr.f32.vlgmr.msra.gmra.mrb[0].mxu1 %v305_v40 }
 0x106   :  { %v118_v43 = vpop.f32.mrb[0].mxu0  ;;  %v251_v44 = vpop.f32.mrb[0].mxu1 }
 0x107   :  { %v119_v45 = vadd.f32 %v118_v43, %v47_v41  ;;  %v120_v46 = vpop.f32.mrb[1].mxu0  ;;  %v252_v47 = vadd.f32 %v251_v44, %v181_v42  ;;  %v253_v48 = vpop.f32.mrb[1].mxu1 }
 0x109   :  { %v125_v49 = vsel %vm124_vm1, %v119_v45, 0.0  ;;  %v257_v50 = vsel %vm124_vm1, %v252_v47, 0.0 }
 0x10a   :  { %126 = vadd.xlane.f32.xlu0 %v125_v49 }
 0x10e   :  { %258 = vadd.xlane.f32.xlu0 %v257_v50 }
 0x197   :  { %v127_v51 = vpop.xlane.xlu0 %126 }
 0x198   :  { %v129_v52 = vmul.f32 0.015625, %v127_v51 }
 0x19a   :  { %v130_v53 = vsub.f32 %v119_v45, %v129_v52 }
 0x19b   :  { %v259_v54 = vpop.xlane.xlu0 %258 }
 0x19c   :  { %v260_v55 = vmul.f32 0.015625, %v259_v54  ;;  %v131_v56 = vmul.f32 %v130_v53, %v130_v53 }
 0x19e   :  { %v261_v57 = vsub.f32 %v252_v47, %v260_v55  ;;  %v132_v58 = vsel %vm124_vm1, %v131_v56, 0.0 }
 0x19f   :  { %133 = vadd.xlane.f32.xlu1 %v132_v58 }
 0x1a0   :  { %v262_v59 = vmul.f32 %v261_v57, %v261_v57 }
 0x1a2   :  { %v263_v60 = vsel %vm124_vm1, %v262_v59, 0.0 }
 0x1a3   :  { %264 = vadd.xlane.f32.xlu1 %v263_v60 }
 0x22c   :  { %v134_v61 = vpop.xlane.xlu1 %133 }
 0x22d   :  { %v135_v62 = vmul.f32 0.015625, %v134_v61 }
 0x22f   :  { %v136_v63 = vadd.f32 1e-05, %v135_v62 }
 0x230   :  { %v265_v0 = vpop.xlane.xlu1 %264 }
 0x231   :  { %386 = vrsqrt.f32 %v136_v63  ;;  %v266_v1 = vmul.f32 0.015625, %v265_v0 }
 0x233   :  { %v267_v2 = vadd.f32 1e-05, %v266_v1 }
 0x235   :  { %388 = vrsqrt.f32 %v267_v2 }
 0x23b   :  { %v387_v3 = vpop.eup %386 }
 0x23c   :  { %v138_v5 = vmul.f32 %v387_v3, %v130_v53 }
 0x23e   :  { %v145_v7 = vmul.f32 %v303_v4, %v138_v5 }
 0x23f   :  { %v389_v8 = vpop.eup %388 }
 0x240   :  { %v269_v9 = vmul.f32 %v389_v8, %v261_v57  ;;  %v152_v10 = vadd.f32 %v304_v6, %v145_v7 }
 0x242   :  { %153 = vst.msk [vmem:[#allocation2] sm:$0x1f] %vm124_vm1, %v152_v10  ;;  %v276_v11 = vmul.f32 %v303_v4, %v269_v9 }
 0x244   :  { %v283_v12 = vadd.f32 %v304_v6, %v276_v11 }
 0x246   :  { %285 = vst.msk [vmem:[#allocation2 + $0x8] sm:$0x1f] %vm124_vm1, %v283_v12 }
 0x247   :  { %401 = shalt.err (!%p398_p4)
}
 0x248   :  { %s402_s7 = scalar_lea.hbm %s591_s5, 256 }
 0x249   :  { %p403_p5 = scmp.ne.s32.totalorder %s591_s5, %s402_s7  ;;  %p406_p6 = scmp.lt.u32.totalorder %s402_s7, %s591_s5 }
 0x24b   :  { %p408_p7 = pnand %p406_p6, %p403_p5 }
 0x24d   :  { %411 = shalt.err (!%p408_p7)
}
 0x24e   :  { %s416_s12 = smov 128   ;;  %s417_s13 = smov 8  }
 0x24f   :  { %297 = dma.vmem_to_hbm [thread:$0]  %s292_s30, 256, %s591_s5, [#allocation3], %s416_s12, %s416_s12, %s417_s13  }
 0x250   :  { %412 = dma.done.wait [#allocation3], 256  }
 0x251   :  { %413 = vsyncadd [#allocation3], 4294967040 }
 0x252   :  { %301 = vsyncpa [#allocation3], 1 }

// kernel: clip_model_s2_forward.7
= control target key start
LH: loop header
LB: loop body
LE: loop exit
PB: predicated region body
PF: predicated region fallthrough
CT: control target
= control target key end

     0   :  { %vm24_vm0 = vcmask 516096   ;;  %s455_s0 = inlined_call_operand.vmem [shape: f32[2,5,64], index: 0, kind: input, shape index: {}]   ;;  %s456_s1 = inlined_call_operand.vmem [shape: f32[1,64], index: 1, kind: input, shape index: {}]   ;;  %s457_s2 = inlined_call_operand.vmem [shape: f32[1,64], index: 2, kind: input, shape index: {}]   ;;  %s458_s3 = inlined_call_operand.vmem [shape: f32[64,16], index: 3, kind: input, shape index: {}]   ;;  %s459_s4 = inlined_call_operand.vmem [shape: f32[1,16], index: 4, kind: input, shape index: {}]   ;;  %s460_s5 = inlined_call_operand.hbm [shape: f32[2,16], index: 5, kind: output, shape index: {}]  }
   0x1   :  { %v21_v0 = vld [vmem:[%s455_s0] sm:$0x1f]  ;;  %v243_v1 = vld [vmem:[%s455_s0 + $0x8] sm:$0x1f] }
   0x2   :  { %v25_v2 = vsel %vm24_vm0, %v21_v0, 0.0 }
   0x3   :  { %10 = vsyncpa [#allocation3], 0  ;;  %26 = vadd.xlane.f32.xlu0 %v25_v2  ;;  %v130_v3 = vsel %vm24_vm0, %v243_v1, 0.0  ;;  %v41_v14 = vld [vmem:[%s458_s3] sm:$0xff]  ;;  %v42_v15 = vld [vmem:[%s458_s3 + $0x8] sm:$0xff]  ;;  %v357_v17 = vmov 0.0|0.0  }
   0x4   :  { %v302_v16 = vpack.c.bf16 %v42_v15, %v41_v14  ;;  %301 = vmatprep.subr.bf16.mxu0 %v357_v17  ;;  %313 = vmatprep.subr.bf16.mxu1 %v357_v17  ;;  %v43_v18 = vld [vmem:[%s458_s3 + $0x10] sm:$0xff]  ;;  %v44_v19 = vld [vmem:[%s458_s3 + $0x18] sm:$0xff]  ;;  %v45_v21 = vld [vmem:[%s458_s3 + $0x20] sm:$0xff]  ;;  %vm358_vm1 = vmmov 0   ;;  %v359_v23 = vmov 0.0   ;;  %vm50_vm2 = vcmask 523264  }
   0x5   :  { %v305_v20 = vpack.c.bf16 %v44_v19, %v43_v18  ;;  %v46_v22 = vld [vmem:[%s458_s3 + $0x28] sm:$0xff]  ;;  %279 = vmatprep.mubr.msk.f32.mxu0 %vm358_vm1, %v359_v23  ;;  %298 = vmatprep.mubr.msk.f32.mxu1 %vm358_vm1, %v359_v23  ;;  %v47_v25 = vld [vmem:[%s458_s3 + $0x30] sm:$0xff]  ;;  %v48_v26 = vld [vmem:[%s458_s3 + $0x38] sm:$0xff]  ;;  %vm124_vm3 = vcmask 122880   ;;  %s360_s0 = smov [#allocation2]  }
   0x6   :  { %303 = vmatpush3.bf16.msra.mxu0 %v302_v16  ;;  %315 = vmatpush3.bf16.msra.mxu1 %v302_v16  ;;  %v308_v24 = vpack.c.bf16 %v46_v22, %v45_v21  ;;  %v311_v27 = vpack.c.bf16 %v48_v26, %v47_v25  ;;  %v22_v35 = vld [vmem:[%s456_s1] sm:$0x1]  ;;  %s234_s22 = sshll.u32 %s360_s0, 4  ;;  %s235_s22 = int_to_ptr.vmem [resolvable:$true] %s234_s22 }
   0x7   :  { %131 = vadd.xlane.f32.xlu0 %v130_v3  ;;  %304 = vmatprep.subr.bf16.mxu0 %v357_v17  ;;  %v23_v37 = vld [vmem:[%s457_s2] sm:$0x1]  ;;  %p338_p1 = scmp.lt.s32.totalorder %s235_s22, %s235_s22 }
   0x8   :  { %316 = vmatprep.subr.bf16.mxu1 %v357_v17  ;;  %v128_v40 = vld [vmem:[%s456_s1] sm:$0x1] }
   0x9   :  { %v129_v43 = vld [vmem:[%s457_s2] sm:$0x1]  ;;  %s333_s2 = scalar_lea.vmem %s235_s22, 32 }
   0xa   :  { %306 = vmatpush3.bf16.msra.mxu0 %v305_v20  ;;  %318 = vmatpush3.bf16.msra.mxu1 %v305_v20  ;;  %v49_v46 = vld [vmem:[%s459_s4] sm:$0x1]  ;;  %p334_p0 = scmp.ne.s32.totalorder %s235_s22, %s333_s2  ;;  %p339_p2 = scmp.lt.s32.totalorder %s333_s2, %s333_s2 }
   0xb   :  { %307 = vmatprep.subr.bf16.mxu0 %v357_v17  ;;  %319 = vmatprep.subr.bf16.mxu1 %v357_v17  ;;  %v153_v50 = vld [vmem:[%s459_s4] sm:$0x1] }
   0xc   :  { %p340_p3 = por %p339_p2, %p338_p1 }
   0xe   :  { %309 = vmatpush3.bf16.msra.mxu0 %v308_v24  ;;  %321 = vmatpush3.bf16.msra.mxu1 %v308_v24  ;;  %p341_p4 = pnand %p340_p3, %p334_p0 }
   0xf   :  { %310 = vmatprep.subr.bf16.mxu0 %v357_v17  ;;  %322 = vmatprep.subr.bf16.mxu1 %v357_v17 }
  0x12   :  { %312 = vmatpush3.bf16.msra.mxu0 %v311_v27  ;;  %324 = vmatpush3.bf16.msra.mxu1 %v311_v27 }
  0x90   :  { %v27_v4 = vpop.xlane.xlu0 %26 }
  0x91   :  { %v29_v5 = vmul.f32 0.015625, %v27_v4 }
  0x93   :  { %v30_v6 = vsub.f32 %v21_v0, %v29_v5 }
  0x94   :  { %v132_v7 = vpop.xlane.xlu0 %131 }
  0x95   :  { %v133_v8 = vmul.f32 0.015625, %v132_v7  ;;  %v31_v9 = vmul.f32 %v30_v6, %v30_v6 }
  0x97   :  { %v134_v10 = vsub.f32 %v243_v1, %v133_v8  ;;  %v32_v11 = vsel %vm24_vm0, %v31_v9, 0.0 }
  0x98   :  { %33 = vadd.xlane.f32.xlu1 %v32_v11 }
  0x99   :  { %v135_v12 = vmul.f32 %v134_v10, %v134_v10 }
  0x9b   :  { %v136_v13 = vsel %vm24_vm0, %v135_v12, 0.0 }
  0x9c   :  { %137 = vadd.xlane.f32.xlu1 %v136_v13 }
 0x125   :  { %v34_v28 = vpop.xlane.xlu1 %33 }
 0x126   :  { %v35_v29 = vmul.f32 0.015625, %v34_v28 }
 0x128   :  { %v36_v30 = vadd.f32 1e-05, %v35_v29 }
 0x129   :  { %v138_v31 = vpop.xlane.xlu1 %137 }
 0x12a   :  { %329 = vrsqrt.f32 %v36_v30  ;;  %v139_v32 = vmul.f32 0.015625, %v138_v31 }
 0x12c   :  { %v140_v33 = vadd.f32 1e-05, %v139_v32 }
 0x12e   :  { %331 = vrsqrt.f32 %v140_v33 }
 0x134   :  { %v330_v34 = vpop.eup %329 }
 0x135   :  { %v38_v36 = vmul.f32 %v330_v34, %v30_v6 }
 0x137   :  { %v39_v38 = vmul.f32 %v38_v36, %v22_v35 }
 0x138   :  { %v332_v39 = vpop.eup %331 }
 0x139   :  { %v40_v41 = vadd.f32 %v39_v38, %v23_v37  ;;  %v142_v42 = vmul.f32 %v332_v39, %v134_v10 }
 0x13b   :  { %280 = vmatmul.mubr.msk.f32.vlgmr.msra.gmra.mrb[0].mxu0 %vm50_vm2, %v40_v41  ;;  %v143_v44 = vmul.f32 %v142_v42, %v128_v40 }
 0x13d   :  { %v144_v45 = vadd.f32 %v143_v44, %v129_v43 }
 0x13f   :  { %299 = vmatmul.mubr.msk.f32.vlgmr.msra.gmra.mrb[0].mxu1 %vm50_vm2, %v144_v45 }
 0x20e   :  { %v120_v47 = vpop.f32.mrb[0].mxu0 }
 0x20f   :  { %v121_v48 = vadd.f32 %v120_v47, %v49_v46  ;;  %v281_v49 = vpop.f32.mrb[1].mxu0 }
 0x211   :  { %125 = vst.msk [vmem:[#allocation2] sm:$0x1] %vm124_vm3, %v121_v48 }
 0x212   :  { %v223_v51 = vpop.f32.mrb[0].mxu1 }
 0x213   :  { %v224_v52 = vadd.f32 %v223_v51, %v153_v50  ;;  %v300_v53 = vpop.f32.mrb[1].mxu1 }
 0x215   :  { %227 = vst.msk [vmem:[#allocation2 + $0x1] sm:$0x1] %vm124_vm3, %v224_v52 }
 0x216   :  { %344 = shalt.err (!%p341_p4)
}
 0x217   :  { %s345_s25 = scalar_lea.hbm %s460_s5, 32 }
 0x218   :  { %p346_p5 = scmp.ne.s32.totalorder %s460_s5, %s345_s25  ;;  %p349_p6 = scmp.lt.u32.totalorder %s345_s25, %s460_s5 }
 0x21a   :  { %p351_p7 = pnand %p349_p6, %p346_p5 }
 0x21c   :  { %354 = shalt.err (!%p351_p7)
}
 0x21d   :  { %237 = dma.vmem_to_hbm [thread:$0]  %s235_s22, 32, %s460_s5, [#allocation3]  }
 0x21e   :  { %355 = dma.done.wait [#allocation3], 32  }
 0x21f   :  { %356 = vsyncadd [#allocation3], 4294967264 }
 0x220   :  { %241 = vsyncpa [#allocation3], 1 }

// kernel: clip_model_s2_forward.5
= control target key start
LH: loop header
LB: loop body
LE: loop exit
PB: predicated region body
PF: predicated region fallthrough
CT: control target
= control target key end

     0   :  { %18 = vsyncpa [#allocation3], 0  ;;  %s3212_s0 = inlined_call_operand.hbm [shape: f32[2,5,64], index: 0, kind: input, shape index: {}]   ;;  %s3213_s1 = inlined_call_operand.hbm [shape: f32[1,64], index: 1, kind: input, shape index: {}]   ;;  %s3214_s2 = inlined_call_operand.hbm [shape: f32[1,64], index: 2, kind: input, shape index: {}]   ;;  %s3215_s3 = inlined_call_operand.hbm [shape: f32[64,192], index: 3, kind: input, shape index: {}]   ;;  %s3216_s4 = inlined_call_operand.hbm [shape: f32[1,192], index: 4, kind: input, shape index: {}]   ;;  %s3217_s5 = inlined_call_operand.hbm [shape: f32[64,64], index: 5, kind: input, shape index: {}]   ;;  %s3218_s6 = inlined_call_operand.hbm [shape: f32[1,64], index: 6, kind: input, shape index: {}]   ;;  %s3219_s7 = inlined_call_operand.hbm [shape: f32[1,64], index: 7, kind: input, shape index: {}]   ;;  %s3220_s8 = inlined_call_operand.hbm [shape: f32[1,64], index: 8, kind: input, shape index: {}]   ;;  %s3221_s9 = inlined_call_operand.hbm [shape: f32[64,256], index: 9, kind: input, shape index: {}]   ;;  %s3222_s10 = inlined_call_operand.hbm [shape: f32[1,256], index: 10, kind: input, shape index: {}]   ;;  %s3223_s11 = inlined_call_operand.hbm [shape: f32[256,64], index: 11, kind: input, shape index: {}]   ;;  %s3224_s12 = inlined_call_operand.hbm [shape: f32[1,64], index: 12, kind: input, shape index: {}]   ;;  %s3225_s13 = inlined_call_operand.hbm [shape: f32[2,5,64], index: 13, kind: output, shape index: {}]  }
   0x1   :  { %19 = vsyncpa [#allocation6], 0 }
   0x2   :  { %20 = vsyncpa [#allocation9], 0 }
   0x3   :  { %21 = vsyncpa [#allocation12], 0 }
   0x4   :  { %22 = vsyncpa [#allocation15], 0 }
   0x5   :  { %23 = vsyncpa [#allocation18], 0 }
   0x6   :  { %24 = vsyncpa [#allocation21], 0 }
   0x7   :  { %25 = vsyncpa [#allocation4], 0  ;;  %s2619_s25 = smov [#allocation5]   ;;  %s2620_s27 = smov [#allocation8]  }
   0x8   :  { %s44_s26 = sshll.u32 %s2619_s25, 4  ;;  %s63_s28 = sshll.u32 %s2620_s27, 4  ;;  %s45_s26 = int_to_ptr.vmem [resolvable:$true] %s44_s26  ;;  %s2713_s28 = int_to_ptr.vmem [resolvable:$true] %s63_s28 }
   0x9   :  { %s2295_s14 = scalar_lea.hbm %s3213_s1, 16 }
   0xa   :  { %p2296_p0 = scmp.ne.s32.totalorder %s3213_s1, %s2295_s14  ;;  %p2299_p1 = scmp.lt.u32.totalorder %s2295_s14, %s3213_s1 }
   0xc   :  { %p2301_p2 = pnand %p2299_p1, %p2296_p0 }
   0xe   :  { %2304 = shalt.err (!%p2301_p2)
}
   0xf   :  { %s2305_s19 = scalar_lea.vmem %s45_s26, 16  ;;  %s2309_s20 = scalar_lea.vmem %s45_s26, 32 }
  0x10   :  { %p2306_p3 = scmp.ne.s32.totalorder %s45_s26, %s2305_s19  ;;  %p2310_p4 = scmp.lt.s32.totalorder %s45_s26, %s45_s26 }
  0x11   :  { %p2311_p5 = scmp.lt.s32.totalorder %s2309_s20, %s2305_s19 }
  0x13   :  { %p2312_p6 = por %p2311_p5, %p2310_p4 }
  0x15   :  { %p2313_p7 = pnand %p2312_p6, %p2306_p3 }
  0x17   :  { %2316 = shalt.err (!%p2313_p7)
}
  0x18   :  { %47 = dma.hbm_to_vmem [thread:$0]  %s3213_s1, 16, %s45_s26, [#allocation6]  }
  0x19   :  { %s2317_s25 = scalar_lea.hbm %s3215_s3, 2048 }
  0x1a   :  { %p2318_p8 = scmp.ne.s32.totalorder %s3215_s3, %s2317_s25  ;;  %p2321_p9 = scmp.lt.u32.totalorder %s2317_s25, %s3215_s3 }
  0x1c   :  { %p2323_p10 = pnand %p2321_p9, %p2318_p8 }
  0x1e   :  { %2326 = shalt.err (!%p2323_p10)
}
  0x1f   :  { %s2327_s15 = scalar_lea.vmem %s2713_s28, 2048  ;;  %p2332_p12 = scmp.lt.s32.totalorder %s2713_s28, %s2713_s28 }
  0x20   :  { %p2328_p11 = scmp.ne.s32.totalorder %s2713_s28, %s2327_s15  ;;  %p2333_p13 = scmp.lt.s32.totalorder %s2327_s15, %s2327_s15 }
  0x22   :  { %p2334_p0 = por %p2333_p13, %p2332_p12 }
  0x24   :  { %p2335_p1 = pnand %p2334_p0, %p2328_p11 }
  0x26   :  { %2338 = shalt.err (!%p2335_p1)
}
  0x27   :  { %s2621_s1 = smov 256   ;;  %s2622_s26 = smov 16  }
  0x28   :  { %69 = dma.hbm_to_vmem [thread:$0]  %s3215_s3, 2048, %s2713_s28, [#allocation9], %s2621_s1, %s2621_s1, %s2622_s26  }
  0x29   :  { %s2623_s18 = smov [#allocation11]   ;;  %s2624_s20 = smov [#allocation14]  }
  0x2a   :  { %s85_s19 = sshll.u32 %s2623_s18, 4  ;;  %s108_s21 = sshll.u32 %s2624_s20, 4  ;;  %s86_s19 = int_to_ptr.vmem [resolvable:$true] %s85_s19  ;;  %s2747_s21 = int_to_ptr.vmem [resolvable:$true] %s108_s21 }
  0x2b   :  { %s2339_s24 = scalar_lea.hbm %s3217_s5, 1024 }
  0x2c   :  { %p2340_p2 = scmp.ne.s32.totalorder %s3217_s5, %s2339_s24  ;;  %p2343_p3 = scmp.lt.u32.totalorder %s2339_s24, %s3217_s5 }
  0x2e   :  { %p2345_p4 = pnand %p2343_p3, %p2340_p2 }
  0x30   :  { %2348 = shalt.err (!%p2345_p4)
}
  0x31   :  { %s2349_s3 = scalar_lea.vmem %s86_s19, 1024  ;;  %p2354_p6 = scmp.lt.s32.totalorder %s86_s19, %s86_s19 }
  0x32   :  { %p2350_p5 = scmp.ne.s32.totalorder %s86_s19, %s2349_s3  ;;  %p2355_p7 = scmp.lt.s32.totalorder %s2349_s3, %s2349_s3 }
  0x34   :  { %p2356_p8 = por %p2355_p7, %p2354_p6 }
  0x36   :  { %p2357_p9 = pnand %p2356_p8, %p2350_p5 }
  0x38   :  { %2360 = shalt.err (!%p2357_p9)
}
  0x39   :  { %s2625_s28 = smov 128   ;;  %s2626_s14 = smov 8  }
  0x3a   :  { %91 = dma.hbm_to_vmem [thread:$0]  %s3217_s5, 1024, %s86_s19, [#allocation12], %s2625_s28, %s2625_s28, %s2626_s14  }
  0x3b   :  { %s2361_s20 = scalar_lea.hbm %s3219_s7, 16 }
  0x3c   :  { %p2362_p10 = scmp.ne.s32.totalorder %s3219_s7, %s2361_s20  ;;  %p2365_p11 = scmp.lt.u32.totalorder %s2361_s20, %s3219_s7 }
  0x3e   :  { %p2367_p12 = pnand %p2365_p11, %p2362_p10 }
  0x40   :  { %2370 = shalt.err (!%p2367_p12)
}
  0x41   :  { %s2371_s27 = scalar_lea.vmem %s2747_s21, 16  ;;  %s2375_s5 = scalar_lea.vmem %s2747_s21, 32 }
  0x42   :  { %p2372_p13 = scmp.ne.s32.totalorder %s2747_s21, %s2371_s27  ;;  %p2376_p0 = scmp.lt.s32.totalorder %s2747_s21, %s2747_s21 }
  0x43   :  { %p2377_p1 = scmp.lt.s32.totalorder %s2375_s5, %s2371_s27 }
  0x45   :  { %p2378_p2 = por %p2377_p1, %p2376_p0 }
  0x47   :  { %p2379_p3 = pnand %p2378_p2, %p2372_p13 }
  0x49   :  { %2382 = shalt.err (!%p2379_p3)
}
  0x4a   :  { %111 = dma.hbm_to_vmem [thread:$0]  %s3219_s7, 16, %s2747_s21, [#allocation15]  }
  0x4b   :  { %s2627_s30 = smov [#allocation17]   ;;  %s2628_s15 = smov [#allocation20]  }
  0x4c   :  { %s127_s3 = sshll.u32 %s2627_s30, 4  ;;  %s149_s16 = sshll.u32 %s2628_s15, 4  ;;  %s128_s3 = int_to_ptr.vmem [resolvable:$true] %s127_s3  ;;  %s2782_s16 = int_to_ptr.vmem [resolvable:$true] %s149_s16 }
  0x4d   :  { %s2383_s20 = scalar_lea.hbm %s3221_s9, 2048 }
  0x4e   :  { %p2384_p4 = scmp.ne.s32.totalorder %s3221_s9, %s2383_s20  ;;  %p2387_p5 = scmp.lt.u32.totalorder %s2383_s20, %s3221_s9 }
  0x50   :  { %p2389_p6 = pnand %p2387_p5, %p2384_p4 }
  0x52   :  { %2392 = shalt.err (!%p2389_p6)
}
  0x53   :  { %s2393_s7 = scalar_lea.vmem %s128_s3, 2048  ;;  %p2398_p8 = scmp.lt.s32.totalorder %s128_s3, %s128_s3 }
  0x54   :  { %p2394_p7 = scmp.ne.s32.totalorder %s128_s3, %s2393_s7  ;;  %p2399_p9 = scmp.lt.s32.totalorder %s2393_s7, %s2393_s7 }
  0x56   :  { %p2400_p10 = por %p2399_p9, %p2398_p8 }
  0x58   :  { %p2401_p11 = pnand %p2400_p10, %p2394_p7 }
  0x5a   :  { %2404 = shalt.err (!%p2401_p11)
}
  0x5b   :  { %133 = dma.hbm_to_vmem [thread:$0]  %s3221_s9, 2048, %s128_s3, [#allocation18], %s2621_s1, %s2621_s1, %s2622_s26  }
  0x5c   :  { %s2405_s29 = scalar_lea.hbm %s3223_s11, 4096 }
  0x5d   :  { %p2406_p12 = scmp.ne.s32.totalorder %s3223_s11, %s2405_s29  ;;  %p2409_p13 = scmp.lt.u32.totalorder %s2405_s29, %s3223_s11 }
  0x5f   :  { %p2411_p0 = pnand %p2409_p13, %p2406_p12 }
  0x61   :  { %2414 = shalt.err (!%p2411_p0)
}
  0x62   :  { %s2415_s20 = scalar_lea.vmem %s2782_s16, 4096  ;;  %p2420_p2 = scmp.lt.s32.totalorder %s2782_s16, %s2782_s16 }
  0x63   :  { %p2416_p1 = scmp.ne.s32.totalorder %s2782_s16, %s2415_s20  ;;  %p2421_p3 = scmp.lt.s32.totalorder %s2415_s20, %s2415_s20 }
  0x65   :  { %p2422_p4 = por %p2421_p3, %p2420_p2 }
  0x67   :  { %p2423_p5 = pnand %p2422_p4, %p2416_p1 }
  0x69   :  { %2426 = shalt.err (!%p2423_p5)
}
  0x6a   :  { %155 = dma.hbm_to_vmem [thread:$0]  %s3223_s11, 4096, %s2782_s16, [#allocation21], %s2625_s28, %s2625_s28, %s2626_s14  }
  0x6b   :  { %s2629_s26 = smov [#allocation2]   ;;  %s2630_s22 = smov [#allocation7]  }
  0x6c   :  { %s31_s3 = sshll.u32 %s2629_s26, 4  ;;  %s54_s23 = sshll.u32 %s2630_s22, 4  ;;  %s32_s3 = int_to_ptr.vmem [resolvable:$true] %s31_s3  ;;  %s55_s23 = int_to_ptr.vmem [resolvable:$true] %s54_s23 }
  0x6d   :  { %s2427_s7 = scalar_lea.hbm %s3212_s0, 256 }
  0x6e   :  { %p2428_p6 = scmp.ne.s32.totalorder %s3212_s0, %s2427_s7  ;;  %p2431_p7 = scmp.lt.u32.totalorder %s2427_s7, %s3212_s0 }
  0x70   :  { %p2433_p8 = pnand %p2431_p7, %p2428_p6 }
  0x72   :  { %2436 = shalt.err (!%p2433_p8)
}
  0x73   :  { %s2437_s11 = scalar_lea.vmem %s32_s3, 256  ;;  %p2442_p10 = scmp.lt.s32.totalorder %s32_s3, %s32_s3 }
  0x74   :  { %p2438_p9 = scmp.ne.s32.totalorder %s32_s3, %s2437_s11  ;;  %p2443_p11 = scmp.lt.s32.totalorder %s2437_s11, %s2437_s11 }
  0x76   :  { %p2444_p12 = por %p2443_p11, %p2442_p10 }
  0x78   :  { %p2445_p13 = pnand %p2444_p12, %p2438_p9 }
  0x7a   :  { %2448 = shalt.err (!%p2445_p13)
}
  0x7b   :  { %37 = dma.hbm_to_vmem [thread:$0]  %s3212_s0, 256, %s32_s3, [#allocation3], %s2625_s28, %s2625_s28, %s2626_s14  }
  0x7c   :  { %s2449_s17 = scalar_lea.hbm %s3214_s2, 16 }
  0x7d   :  { %p2450_p0 = scmp.ne.s32.totalorder %s3214_s2, %s2449_s17  ;;  %p2453_p1 = scmp.lt.u32.totalorder %s2449_s17, %s3214_s2 }
  0x7f   :  { %p2455_p2 = pnand %p2453_p1, %p2450_p0 }
  0x81   :  { %2458 = shalt.err (!%p2455_p2)
}
  0x82   :  { %s2459_s26 = scalar_lea.vmem %s55_s23, 16  ;;  %s2463_s22 = scalar_lea.vmem %s55_s23, 32 }
  0x83   :  { %p2460_p3 = scmp.ne.s32.totalorder %s55_s23, %s2459_s26  ;;  %p2464_p4 = scmp.lt.s32.totalorder %s55_s23, %s55_s23 }
  0x84   :  { %p2465_p5 = scmp.lt.s32.totalorder %s2463_s22, %s2459_s26 }
  0x86   :  { %p2466_p6 = por %p2465_p5, %p2464_p4 }
  0x88   :  { %p2467_p7 = pnand %p2466_p6, %p2460_p3 }
  0x8a   :  { %2470 = shalt.err (!%p2467_p7)
}
  0x8b   :  { %57 = dma.hbm_to_vmem [thread:$0]  %s3214_s2, 16, %s55_s23, [#allocation6]  }
  0x8c   :  { %s2631_s24 = smov [#allocation10]   ;;  %s2632_s7 = smov [#allocation13]  }
  0x8d   :  { %s76_s25 = sshll.u32 %s2631_s24, 4  ;;  %s98_s21 = sshll.u32 %s2632_s7, 4  ;;  %s77_s25 = int_to_ptr.vmem [resolvable:$true] %s76_s25  ;;  %s99_s21 = int_to_ptr.vmem [resolvable:$true] %s98_s21 }
  0x8e   :  { %s2471_s19 = scalar_lea.hbm %s3216_s4, 32 }
  0x8f   :  { %p2472_p8 = scmp.ne.s32.totalorder %s3216_s4, %s2471_s19  ;;  %p2475_p9 = scmp.lt.u32.totalorder %s2471_s19, %s3216_s4 }
  0x91   :  { %p2477_p10 = pnand %p2475_p9, %p2472_p8 }
  0x93   :  { %2480 = shalt.err (!%p2477_p10)
}
  0x94   :  { %s2481_s2 = scalar_lea.vmem %s77_s25, 32  ;;  %p2486_p12 = scmp.lt.s32.totalorder %s77_s25, %s77_s25 }
  0x95   :  { %p2482_p11 = scmp.ne.s32.totalorder %s77_s25, %s2481_s2  ;;  %p2487_p13 = scmp.lt.s32.totalorder %s2481_s2, %s2481_s2 }
  0x97   :  { %p2488_p0 = por %p2487_p13, %p2486_p12 }
  0x99   :  { %p2489_p1 = pnand %p2488_p0, %p2482_p11 }
  0x9b   :  { %2492 = shalt.err (!%p2489_p1)
}
  0x9c   :  { %79 = dma.hbm_to_vmem [thread:$0]  %s3216_s4, 32, %s77_s25, [#allocation9]  }
  0x9d   :  { %s2493_s20 = scalar_lea.hbm %s3218_s6, 16 }
  0x9e   :  { %p2494_p2 = scmp.ne.s32.totalorder %s3218_s6, %s2493_s20  ;;  %p2497_p3 = scmp.lt.u32.totalorder %s2493_s20, %s3218_s6 }
  0xa0   :  { %p2499_p4 = pnand %p2497_p3, %p2494_p2 }
  0xa2   :  { %2502 = shalt.err (!%p2499_p4)
}
  0xa3   :  { %s2503_s0 = scalar_lea.vmem %s99_s21, 16  ;;  %s2507_s3 = scalar_lea.vmem %s99_s21, 32 }
  0xa4   :  { %p2504_p5 = scmp.ne.s32.totalorder %s99_s21, %s2503_s0  ;;  %p2508_p6 = scmp.lt.s32.totalorder %s99_s21, %s99_s21 }
  0xa5   :  { %p2509_p7 = scmp.lt.s32.totalorder %s2507_s3, %s2503_s0 }
  0xa7   :  { %p2510_p8 = por %p2509_p7, %p2508_p6 }
  0xa9   :  { %p2511_p9 = pnand %p2510_p8, %p2504_p5 }
  0xab   :  { %2514 = shalt.err (!%p2511_p9)
}
  0xac   :  { %101 = dma.hbm_to_vmem [thread:$0]  %s3218_s6, 16, %s99_s21, [#allocation12]  }
  0xad   :  { %s2633_s25 = smov [#allocation16]   ;;  %s2634_s27 = smov [#allocation19]  }
  0xae   :  { %s118_s7 = sshll.u32 %s2633_s25, 4  ;;  %s140_s5 = sshll.u32 %s2634_s27, 4  ;;  %s119_s7 = int_to_ptr.vmem [resolvable:$true] %s118_s7  ;;  %s141_s5 = int_to_ptr.vmem [resolvable:$true] %s140_s5 }
  0xaf   :  { %s2515_s16 = scalar_lea.hbm %s3220_s8, 16 }
  0xb0   :  { %p2516_p10 = scmp.ne.s32.totalorder %s3220_s8, %s2515_s16  ;;  %p2519_p11 = scmp.lt.u32.totalorder %s2515_s16, %s3220_s8 }
  0xb2   :  { %p2521_p12 = pnand %p2519_p11, %p2516_p10 }
  0xb4   :  { %2524 = shalt.err (!%p2521_p12)
}
  0xb5   :  { %s2525_s6 = scalar_lea.vmem %s119_s7, 16  ;;  %s2529_s21 = scalar_lea.vmem %s119_s7, 32 }
  0xb6   :  { %p2526_p13 = scmp.ne.s32.totalorder %s119_s7, %s2525_s6  ;;  %p2530_p0 = scmp.lt.s32.totalorder %s119_s7, %s119_s7 }
  0xb7   :  { %p2531_p1 = scmp.lt.s32.totalorder %s2529_s21, %s2525_s6 }
  0xb9   :  { %p2532_p2 = por %p2531_p1, %p2530_p0 }
  0xbb   :  { %p2533_p3 = pnand %p2532_p2, %p2526_p13 }
  0xbd   :  { %2536 = shalt.err (!%p2533_p3)
}
  0xbe   :  { %121 = dma.hbm_to_vmem [thread:$0]  %s3220_s8, 16, %s119_s7, [#allocation15]  }
  0xbf   :  { %s2537_s9 = scalar_lea.hbm %s3222_s10, 32 }
  0xc0   :  { %p2538_p4 = scmp.ne.s32.totalorder %s3222_s10, %s2537_s9  ;;  %p2541_p5 = scmp.lt.u32.totalorder %s2537_s9, %s3222_s10 }
  0xc2   :  { %p2543_p6 = pnand %p2541_p5, %p2538_p4 }
  0xc4   :  { %2546 = shalt.err (!%p2543_p6)
}
  0xc5   :  { %s2547_s3 = scalar_lea.vmem %s141_s5, 32  ;;  %p2552_p8 = scmp.lt.s32.totalorder %s141_s5, %s141_s5 }
  0xc6   :  { %p2548_p7 = scmp.ne.s32.totalorder %s141_s5, %s2547_s3  ;;  %p2553_p9 = scmp.lt.s32.totalorder %s2547_s3, %s2547_s3 }
  0xc8   :  { %p2554_p10 = por %p2553_p9, %p2552_p8 }
  0xca   :  { %p2555_p11 = pnand %p2554_p10, %p2548_p7 }
  0xcc   :  { %2558 = shalt.err (!%p2555_p11)
}
  0xcd   :  { %143 = dma.hbm_to_vmem [thread:$0]  %s3222_s10, 32, %s141_s5, [#allocation18]  }
  0xce   :  { %s2635_s24 = smov [#allocation22]   ;;  %s2559_s19 = scalar_lea.hbm %s3224_s12, 16 }
  0xcf   :  { %s162_s25 = sshll.u32 %s2635_s24, 4  ;;  %p2560_p12 = scmp.ne.s32.totalorder %s3224_s12, %s2559_s19  ;;  %s163_s25 = int_to_ptr.vmem [resolvable:$true] %s162_s25 }
  0xd0   :  { %p2563_p13 = scmp.lt.u32.totalorder %s2559_s19, %s3224_s12 }
  0xd2   :  { %p2565_p0 = pnand %p2563_p13, %p2560_p12 }
  0xd4   :  { %2568 = shalt.err (!%p2565_p0)
}
  0xd5   :  { %s2569_s2 = scalar_lea.vmem %s163_s25, 16  ;;  %s2573_s10 = scalar_lea.vmem %s163_s25, 32 }
  0xd6   :  { %p2570_p1 = scmp.ne.s32.totalorder %s163_s25, %s2569_s2  ;;  %p2574_p2 = scmp.lt.s32.totalorder %s163_s25, %s163_s25 }
  0xd7   :  { %p2575_p3 = scmp.lt.s32.totalorder %s2573_s10, %s2569_s2 }
  0xd9   :  { %p2576_p4 = por %p2575_p3, %p2574_p2 }
  0xdb   :  { %p2577_p5 = pnand %p2576_p4, %p2570_p1 }
  0xdd   :  { %2580 = shalt.err (!%p2577_p5)
}
  0xde   :  { %165 = dma.hbm_to_vmem [thread:$0]  %s3224_s12, 16, %s163_s25, [#allocation21]  }
  0xdf   :  { %2603 = dma.done.wait [#allocation3], 256  }
  0xe0   :  { %2604 = vsyncadd [#allocation3], 4294967040 }
  0xe1   :  { %2605 = dma.done.wait [#allocation6], 32  }
  0xe2   :  { %2606 = vsyncadd [#allocation6], 4294967264 }
  0xe3   :  { %2607 = dma.done.wait [#allocation9], 2080  }
  0xe4   :  { %2608 = vsyncadd [#allocation9], 4294965216 }
  0xe5   :  { %2609 = dma.done.wait [#allocation12], 1040  }
  0xe6   :  { %2610 = vsyncadd [#allocation12], 4294966256 }
  0xe7   :  { %2611 = dma.done.wait [#allocation15], 32  }
  0xe8   :  { %2612 = vsyncadd [#allocation15], 4294967264 }
  0xe9   :  { %2613 = dma.done.wait [#allocation18], 2080  }
  0xea   :  { %2614 = vsyncadd [#allocation18], 4294965216 }
  0xeb   :  { %2615 = dma.done.wait [#allocation21], 4112  }
  0xec   :  { %2616 = vsyncadd [#allocation21], 4294963184  ;;  %vm208_vm0 = vcmask 520192   ;;  %v2906_v0 = vld [vmem:[#allocation2] sm:$0x1f]  ;;  %v240_v8 = vld [vmem:[#allocation8 + $0x18] sm:$0xff]  ;;  %v255_v41 = vlaneseq }
  0xed   :  { %v209_v1 = vsel %vm208_vm0, %v2906_v0, 0.0  ;;  %v238_v7 = vld [vmem:[#allocation8 + $0x8] sm:$0xff]  ;;  %v237_v10 = vld [vmem:[#allocation8] sm:$0xff]  ;;  %v239_v11 = vld [vmem:[#allocation8 + $0x10] sm:$0xff]  ;;  %v2636_v20 = vmov 0.0   ;;  %vm265_vm1 = vcmask 523264  }
  0xee   :  { %210 = vadd.xlane.f32.xlu0 %v209_v1  ;;  %v2912_v9 = vpack.c.bf16 %v240_v8, %v238_v7  ;;  %v2914_v12 = vpack.c.bf16 %v239_v11, %v237_v10  ;;  %v242_v13 = vld [vmem:[#allocation8 + $0x28] sm:$0xff]  ;;  %v244_v14 = vld [vmem:[#allocation8 + $0x38] sm:$0xff]  ;;  %v241_v15 = vld [vmem:[#allocation8 + $0x20] sm:$0xff]  ;;  %333 = vmatprep.mubr.f32.mxu1 %v2636_v20  ;;  %v256_v42 = vshrl.u32 %v255_v41, 7  ;;  %vm2637_vm2 = vmmov 0   ;;  %s2638_s12 = smov 32  }
  0xef   :  { %v2917_v16 = vpack.c.bf16 %v244_v14, %v242_v13  ;;  %v243_v17 = vld [vmem:[#allocation8 + $0x30] sm:$0xff]  ;;  %v246_v18 = vld [vmem:[#allocation8 + $0x48] sm:$0xff]  ;;  %v248_v19 = vld [vmem:[#allocation8 + $0x58] sm:$0xff]  ;;  %2037 = vmatprep.mubr.msk.f32.mxu0 %vm2637_vm2, %v2636_v20  ;;  %s2639_s6 = smov 64   ;;  %vm343_vm3 = vcmask 261120   ;;  %vm434_vm4 = vcmask 1044480  }
  0xf0   :  { %2080 = vmatprep.subr.bf16.mxu1 %v2912_v9  ;;  %v2921_v21 = vpack.c.bf16 %v243_v17, %v241_v15  ;;  %v2924_v22 = vpack.c.bf16 %v248_v19, %v246_v18  ;;  %v245_v23 = vld [vmem:[#allocation8 + $0x40] sm:$0xff]  ;;  %v247_v24 = vld [vmem:[#allocation8 + $0x50] sm:$0xff]  ;;  %v250_v25 = vld [vmem:[#allocation8 + $0x68] sm:$0xff]  ;;  %v2949_v43 = vsub.s32 0, %v256_v42  ;;  %v2954_v49 = vsub.s32 1, %v256_v42  ;;  %s2640_s21 = smov 96  }
  0xf1   :  { %2082 = vmatpush1.bf16.msra.mxu1 %v2914_v12  ;;  %v252_v26 = vld [vmem:[#allocation8 + $0x78] sm:$0xff]  ;;  %v2927_v27 = vpack.c.bf16 %v247_v24, %v245_v23  ;;  %v249_v29 = vld [vmem:[#allocation8 + $0x60] sm:$0xff]  ;;  %v251_v30 = vld [vmem:[#allocation8 + $0x70] sm:$0xff]  ;;  %vm418_vm5 = vcmask 36864   ;;  %vm430_vm6 = vcmask 39936   ;;  %s2642_s15 = smov [#allocation23]  }
  0xf2   :  { %2084 = vmatprep.subr.bf16.mxu1 %v2917_v16  ;;  %v2930_v28 = vpack.c.bf16 %v252_v26, %v250_v25  ;;  %v2933_v31 = vpack.c.bf16 %v251_v30, %v249_v29  ;;  %v2938_v36 = vld [vmem:[#allocation5] ss:$0 sm:$0xff]  ;;  %v2940_v38 = vld [vmem:[#allocation7] ss:$0 sm:$0xff]  ;;  %v253_v44 = vld [vmem:[#allocation10] sm:$0x3] }
  0xf3   :  { %v258_v45 = vrot.slane %v253_v44, %v2949_v43  ;;  %v262_v50 = vrot.slane %v253_v44, %v2954_v49  ;;  %v679_v23 = vld [vmem:[#allocation11] sm:$0xff]  ;;  %v680_v24 = vld [vmem:[#allocation11 + $0x8] sm:$0xff]  ;;  %v681_v25 = vld [vmem:[#allocation11 + $0x10] sm:$0xff]  ;;  %v2641_v26 = vmov 0.0|0.0   ;;  %s1845_s17 = sshll.u32 %s2642_s15, 4  ;;  %s1846_s17 = int_to_ptr.vmem [resolvable:$true] %s1845_s17 }
  0xf4   :  { %2095 = vmatprep.subr.bf16.mxu0 %v2641_v26  ;;  %v2982_v29 = vpack.c.bf16 %v680_v24, %v679_v23  ;;  %v682_v30 = vld [vmem:[#allocation11 + $0x18] sm:$0xff]  ;;  %s2581_s18 = scalar_lea.vmem %s1846_s17, 256  ;;  %p2586_p7 = scmp.lt.s32.totalorder %s1846_s17, %s1846_s17 }
  0xf5   :  { %2086 = vmatpush1.bf16.msra.mxu1 %v2921_v21  ;;  %v808_v23 = vld [vmem:[#allocation17 + $0x50] sm:$0xff]  ;;  %p2582_p6 = scmp.ne.s32.totalorder %s1846_s17, %s2581_s18  ;;  %p2587_p8 = scmp.lt.s32.totalorder %s2581_s18, %s2581_s18 }
  0xf6   :  { %2088 = vmatprep.subr.bf16.mxu1 %v2924_v22  ;;  %2097 = vmatpush3.bf16.msra.mxu0 %v2982_v29 }
  0xf7   :  { %2098 = vmatprep.subr.bf16.mxu0 %v2641_v26  ;;  %p2588_p9 = por %p2587_p8, %p2586_p7 }
  0xf9   :  { %2090 = vmatpush1.bf16.msra.mxu1 %v2927_v27  ;;  %p2589_p10 = pnand %p2588_p9, %p2582_p6 }
  0xfa   :  { %2092 = vmatprep.subr.bf16.mxu1 %v2930_v28 }
  0xfd   :  { %2094 = vmatpush1.bf16.msra.mxu1 %v2933_v31 }
  0xfe   :  { %2001 = vmatprep.subr.mxu1 %v2636_v20 }
 0x17b   :  { %v211_v2 = vpop.xlane.xlu0 %210 }
 0x17c   :  { %v213_v3 = vmul.f32 0.015625, %v211_v2 }
 0x17e   :  { %v214_v4 = vsub.f32 %v2906_v0, %v213_v3 }
 0x180   :  { %v215_v5 = vmul.f32 %v214_v4, %v214_v4 }
 0x182   :  { %v216_v6 = vsel %vm208_vm0, %v215_v5, 0.0 }
 0x183   :  { %217 = vadd.xlane.f32.xlu0 %v216_v6 }
 0x210   :  { %v218_v32 = vpop.xlane.xlu0 %217 }
 0x211   :  { %v219_v33 = vmul.f32 0.015625, %v218_v32  ;;  %v2985_v32 = vpack.c.bf16 %v682_v30, %v681_v25  ;;  %v811_v25 = vld [vmem:[#allocation17 + $0x68] sm:$0xff]  ;;  %v813_v30 = vld [vmem:[#allocation17 + $0x78] sm:$0xff] }
 0x213   :  { %v220_v34 = vadd.f32 1e-05, %v219_v33  ;;  %v683_v33 = vld [vmem:[#allocation11 + $0x20] sm:$0xff]  ;;  %2100 = vmatpush3.bf16.msra.mxu0 %v2985_v32 }
 0x214   :  { %2101 = vmatprep.subr.bf16.mxu0 %v2641_v26 }
 0x215   :  { %2255 = vrsqrt.f32 %v220_v34  ;;  %v684_v34 = vld [vmem:[#allocation11 + $0x28] sm:$0xff] }
 0x21f   :  { %v2256_v35 = vpop.eup %2255 }
 0x220   :  { %v222_v37 = vmul.f32 %v2256_v35, %v214_v4  ;;  %v2989_v35 = vpack.c.bf16 %v684_v34, %v683_v33  ;;  %v3034_v33 = vpack.c.bf16 %v813_v30, %v811_v25  ;;  %v810_v34 = vld [vmem:[#allocation17 + $0x60] sm:$0xff]  ;;  %v939_v25 = vld [vmem:[#allocation20 + $0xc8] sm:$0xff] }
 0x222   :  { %v229_v39 = vmul.f32 %v2938_v36, %v222_v37  ;;  %v685_v37 = vld [vmem:[#allocation11 + $0x30] sm:$0xff]  ;;  %2103 = vmatpush3.bf16.msra.mxu0 %v2989_v35 }
 0x223   :  { %2104 = vmatprep.subr.bf16.mxu0 %v2641_v26 }
 0x224   :  { %v236_v40 = vadd.f32 %v2940_v38, %v229_v39  ;;  %v686_v39 = vld [vmem:[#allocation11 + $0x38] sm:$0xff] }
 0x226   :  { %1865 = vmatmul.mubr.msk.f32.vlgmr.msra.gmra.mrb[0].mxu1 %vm265_vm1, %v236_v40  ;;  %v2993_v40 = vpack.c.bf16 %v686_v39, %v685_v37  ;;  %v812_v37 = vld [vmem:[#allocation17 + $0x70] sm:$0xff] }
 0x227   :  { %2003 = vmatprep.mubr.msk.f32.mxu1 %vm2637_vm2, %v2636_v20  ;;  %v3036_v39 = vpack.c.bf16 %v812_v37, %v810_v34  ;;  %v922_v34 = vld [vmem:[#allocation20 + $0x40] sm:$0xff]  ;;  %v923_v37 = vld [vmem:[#allocation20 + $0x48] sm:$0xff] }
 0x228   :  { %2106 = vmatpush3.bf16.msra.mxu0 %v2993_v40 }
 0x2f9   :  { %v335_v46 = vpop.f32.mrb[0].mxu1 }
 0x2fa   :  { %v336_v47 = vadd.f32 %v335_v46, %v258_v45  ;;  %v337_v48 = vpop.f32.mrb[1].mxu1  ;;  %v3000_v46 = vld [vmem:[#allocation2 + $0x8] sm:$0x1f] }
 0x2fb   :  { %v338_v52 = vadd.f32 %v337_v48, %v262_v50  ;;  %v3004_v50 = vld [vmem:[#allocation13] ss:$0 sm:$0xff] }
 0x2fc   :  { %510 = vrot.lane.b32.xlu0 %v336_v47, %s2638_s12  ;;  %341 = vrot.lane.b32.xlu1 %v336_v47, %s2639_s6 }
 0x36e   :  { %v342_v51 = vpop.permute.xlu1 %341  ;;  %v511_v61 = vpop.permute.xlu0 %510 }
 0x36f   :  { %2002 = vmatpush3.xpose.msk.msra.mxu1 %vm343_vm3, %v342_v51 }
 0x370   :  { %2006 = vmatprep.subr.mxu1 %v2636_v20 }
 0x372   :  { %2004 = vmatmul.mubr.msk.f32.vlgmr.msra.gmra.mrb[2].mxu1 %vm343_vm3, %v336_v47 }
 0x373   :  { %2007 = vmatpush3.msk.msra.mxu1 %vm434_vm4, %v338_v52  ;;  %2008 = vmatprep.mubr.msk.f32.mxu1 %vm2637_vm2, %v2636_v20 }
 0x374   :  { %2011 = vmatprep.subr.mxu1 %v2636_v20 }
 0x445   :  { %v414_v53 = vpop.f32.mrb[2].mxu1 }
 0x446   :  { %v2005_v54 = vpop.f32.mrb[3].mxu1  ;;  %v419_v55 = vsel %vm418_vm5, %v414_v53, -inf }
 0x447   :  { %420 = vmax.xlane.f32.xlu1 %v419_v55 }
 0x4d4   :  { %v421_v56 = vpop.xlane.xlu1 %420 }
 0x4d5   :  { %v422_v57 = vsub.f32 %v414_v53, %v421_v56 }
 0x4d7   :  { %v423_v58 = vmul.f32 1.442695, %v422_v57 }
 0x4d9   :  { %2257 = vpow2.f32 %v423_v58 }
 0x4e3   :  { %v2258_v59 = vpop.eup %2257 }
 0x4e4   :  { %v425_v60 = vsel %vm418_vm5, %v2258_v59, 0.0 }
 0x4e5   :  { %426 = vadd.xlane.f32.xlu0 %v425_v60 }
 0x4fb   :  { %508 = vrot.lane.b32.xlu0 %v336_v47, %s2640_s21  ;;  %v1029_v47 = vsel %vm208_vm0, %v3000_v46, 0.0 }
 0x572   :  { %v427_v62 = vpop.xlane.xlu0 %426 }
 0x573   :  { %2259 = vrcp.f32 %v427_v62 }
 0x576   :  { %v509_v2 = vpop.permute.xlu0 %508 }
 0x57d   :  { %v2260_v63 = vpop.eup %2259 }
 0x57e   :  { %v429_v1 = vmul.f32 %v2260_v63, %v2258_v59 }
 0x580   :  { %2009 = vmatmul.mubr.msk.f32.vlgmr.msra.gmra.mrb[4].mxu1 %vm430_vm6, %v429_v1  ;;  %v799_v1 = vld [vmem:[#allocation17 + $0x8] sm:$0xff] }
 0x581   :  { %2012 = vmatpush3.xpose.msk.msra.mxu1 %vm343_vm3, %v511_v61  ;;  %2013 = vmatprep.mubr.msk.f32.mxu1 %vm2637_vm2, %v2636_v20 }
 0x582   :  { %2016 = vmatprep.subr.mxu1 %v2636_v20 }
 0x584   :  { %2014 = vmatmul.mubr.msk.f32.vlgmr.msra.gmra.mrb[6].mxu1 %vm343_vm3, %v509_v2  ;;  %v801_v2 = vld [vmem:[#allocation17 + $0x18] sm:$0xff] }
 0x585   :  { %2018 = vmatprep.mubr.msk.f32.mxu1 %vm2637_vm2, %v2636_v20 }
 0x653   :  { %v504_v3 = vpop.f32.mrb[4].mxu1 }
 0x654   :  { %v2010_v4 = vpop.f32.mrb[5].mxu1 }
 0x655   :  { %v798_v4 = vld [vmem:[#allocation17] sm:$0xff] }
 0x657   :  { %v582_v5 = vpop.f32.mrb[6].mxu1 }
 0x658   :  { %v2015_v6 = vpop.f32.mrb[7].mxu1  ;;  %v586_v7 = vsel %vm418_vm5, %v582_v5, -inf }
 0x659   :  { %587 = vmax.xlane.f32.xlu0 %v586_v7  ;;  %v803_v7 = vld [vmem:[#allocation17 + $0x28] sm:$0xff] }
 0x65d   :  { %1030 = vadd.xlane.f32.xlu0 %v1029_v47 }
 0x6e6   :  { %v588_v8 = vpop.xlane.xlu0 %587 }
 0x6e7   :  { %v589_v10 = vsub.f32 %v582_v5, %v588_v8  ;;  %v800_v5 = vld [vmem:[#allocation17 + $0x10] sm:$0xff]  ;;  %v805_v8 = vld [vmem:[#allocation17 + $0x38] sm:$0xff] }
 0x6e8   :  { %v3018_v6 = vpack.c.bf16 %v800_v5, %v798_v4  ;;  %v918_v4 = vld [vmem:[#allocation20 + $0x20] sm:$0xff]  ;;  %v919_v5 = vld [vmem:[#allocation20 + $0x28] sm:$0xff] }
 0x6e9   :  { %v590_v11 = vmul.f32 1.442695, %v589_v10  ;;  %v3022_v10 = vpack.c.bf16 %v805_v8, %v803_v7  ;;  %v3076_v7 = vpack.c.bf16 %v919_v5, %v918_v4  ;;  %v936_v8 = vld [vmem:[#allocation20 + $0xb0] sm:$0xff] }
 0x6ea   :  { %v1031_v55 = vpop.xlane.xlu0 %1030 }
 0x6eb   :  { %2261 = vpow2.f32 %v590_v11  ;;  %v1032_v56 = vmul.f32 0.015625, %v1031_v55  ;;  %v802_v11 = vld [vmem:[#allocation17 + $0x20] sm:$0xff]  ;;  %v3043_v55 = vld [vmem:[#allocation16] ss:$0 sm:$0xff] }
 0x6ed   :  { %v1033_v59 = vsub.f32 %v3000_v46, %v1032_v56 }
 0x6ef   :  { %v1034_v62 = vmul.f32 %v1033_v59, %v1033_v59 }
 0x6f1   :  { %v1035_v63 = vsel %vm208_vm0, %v1034_v62, 0.0  ;;  %v917_v62 = vld [vmem:[#allocation20 + $0x18] sm:$0xff] }
 0x6f5   :  { %v2262_v13 = vpop.eup %2261 }
 0x6f6   :  { %v592_v14 = vsel %vm418_vm5, %v2262_v13, 0.0 }
 0x6f7   :  { %593 = vadd.xlane.f32.xlu1 %v592_v14 }
 0x708   :  { %597 = vrot.lane.b32.xlu1 %v338_v52, %s2640_s21 }
 0x784   :  { %v594_v15 = vpop.xlane.xlu1 %593 }
 0x785   :  { %2263 = vrcp.f32 %v594_v15  ;;  %v807_v15 = vld [vmem:[#allocation17 + $0x48] sm:$0xff] }
 0x788   :  { %v598_v17 = vpop.permute.xlu1 %597 }
 0x789   :  { %2017 = vmatpush3.msk.msra.mxu1 %vm434_vm4, %v598_v17  ;;  %v809_v17 = vld [vmem:[#allocation17 + $0x58] sm:$0xff] }
 0x78f   :  { %v2264_v18 = vpop.eup %2263 }
 0x790   :  { %v596_v19 = vmul.f32 %v2264_v18, %v2262_v13  ;;  %v804_v13 = vld [vmem:[#allocation17 + $0x30] sm:$0xff]  ;;  %v3028_v18 = vpack.c.bf16 %v809_v17, %v807_v15  ;;  %v921_v17 = vld [vmem:[#allocation20 + $0x38] sm:$0xff] }
 0x791   :  { %v3024_v14 = vpack.c.bf16 %v804_v13, %v802_v11  ;;  %v937_v11 = vld [vmem:[#allocation20 + $0xb8] sm:$0xff]  ;;  %v920_v15 = vld [vmem:[#allocation20 + $0x30] sm:$0xff] }
 0x792   :  { %2019 = vmatmul.mubr.msk.f32.vlgmr.msra.gmra.mrb[8].mxu1 %vm430_vm6, %v596_v19  ;;  %v806_v19 = vld [vmem:[#allocation17 + $0x40] sm:$0xff]  ;;  %v3080_v13 = vpack.c.bf16 %v937_v11, %v936_v8 }
 0x793   :  { %893 = vmatprep.mubr.f32.mxu1 %v2636_v20  ;;  %v3030_v24 = vpack.c.bf16 %v808_v23, %v806_v19  ;;  %v3082_v19 = vpack.c.bf16 %v921_v17, %v920_v15  ;;  %v938_v23 = vld [vmem:[#allocation20 + $0xc0] sm:$0xff] }
 0x794   :  { %v3086_v30 = vpack.c.bf16 %v939_v25, %v938_v23  ;;  %v1072_v23 = vld [vmem:[#allocation10] sm:$0x3] }
 0x795   :  { %v1077_v25 = vrot.slane %v1072_v23, %v2949_v43 }
 0x865   :  { %v670_v41 = vpop.f32.mrb[8].mxu1 }
 0x866   :  { %675 = vrot.lane.b32.xlu1 %v670_v41, %s2638_s12  ;;  %v2020_v42 = vpop.f32.mrb[9].mxu1 }
 0x8d8   :  { %v676_v44 = vpop.permute.xlu1 %675 }
 0x8d9   :  { %v678_v45 = vsel %vm343_vm3, %v504_v3, %v676_v44  ;;  %v3016_v3 = vpack.c.bf16 %v801_v2, %v799_v1  ;;  %v935_v1 = vld [vmem:[#allocation20 + $0xa8] sm:$0xff] }
 0x8da   :  { %2038 = vmatmul.mubr.msk.f32.vlgmr.msra.gmra.mrb[0].mxu0 %vm265_vm1, %v678_v45 }
 0x8db   :  { %2108 = vmatprep.subr.bf16.mxu1 %v3016_v3 }
 0x8dc   :  { %2110 = vmatpush1.bf16.msra.mxu1 %v3018_v6 }
 0x8dd   :  { %2112 = vmatprep.subr.bf16.mxu1 %v3022_v10 }
 0x8e0   :  { %2114 = vmatpush1.bf16.msra.mxu1 %v3024_v14 }
 0x8e1   :  { %2116 = vmatprep.subr.bf16.mxu1 %v3028_v18 }
 0x8e4   :  { %2118 = vmatpush1.bf16.msra.mxu1 %v3030_v24 }
 0x8e5   :  { %2120 = vmatprep.subr.bf16.mxu1 %v3034_v33 }
 0x8e8   :  { %2122 = vmatpush1.bf16.msra.mxu1 %v3036_v39 }
 0x8e9   :  { %2156 = vmatprep.subr.bf16.mxu1 %v2912_v9 }
 0x9ad   :  { %v756_v48 = vpop.f32.mrb[0].mxu0 }
 0x9ae   :  { %v760_v51 = vadd.f32 %v756_v48, %v2906_v0  ;;  %v2039_v52 = vpop.f32.mrb[1].mxu0 }
 0x9af   :  { %v3041_v52 = vld [vmem:[#allocation14] ss:$0 sm:$0xff] }
 0x9b0   :  { %v3008_v53 = vadd.f32 %v3004_v50, %v760_v51 }
 0x9b2   :  { %v771_v54 = vsel %vm208_vm0, %v3008_v53, 0.0 }
 0x9b3   :  { %772 = vadd.xlane.f32.xlu1 %v771_v54 }
 0xa40   :  { %v773_v57 = vpop.xlane.xlu1 %772 }
 0xa41   :  { %v774_v58 = vmul.f32 0.015625, %v773_v57 }
 0xa43   :  { %v775_v60 = vsub.f32 %v3008_v53, %v774_v58 }
 0xa45   :  { %v776_v61 = vmul.f32 %v775_v60, %v775_v60 }
 0xa47   :  { %v777_v0 = vsel %vm208_vm0, %v776_v61, 0.0  ;;  %v916_v61 = vld [vmem:[#allocation20 + $0x10] sm:$0xff] }
 0xa48   :  { %778 = vadd.xlane.f32.xlu0 %v777_v0  ;;  %v3070_v0 = vpack.c.bf16 %v917_v62, %v916_v61 }
 0xa4c   :  { %1036 = vadd.xlane.f32.xlu0 %v1035_v63  ;;  %v934_v63 = vld [vmem:[#allocation20 + $0xa0] sm:$0xff] }
 0xa4d   :  { %v3074_v2 = vpack.c.bf16 %v935_v1, %v934_v63 }
 0xad5   :  { %v779_v41 = vpop.xlane.xlu0 %778 }
 0xad6   :  { %v780_v42 = vmul.f32 0.015625, %v779_v41  ;;  %v3088_v41 = vpack.c.bf16 %v923_v37, %v922_v34  ;;  %v1081_v34 = vrot.slane %v1072_v23, %v2954_v49 }
 0xad8   :  { %v781_v44 = vadd.f32 1e-05, %v780_v42  ;;  %v940_v42 = vld [vmem:[#allocation20 + $0xd0] sm:$0xff] }
 0xad9   :  { %v1037_v45 = vpop.xlane.xlu0 %1036 }
 0xada   :  { %2265 = vrsqrt.f32 %v781_v44  ;;  %v1038_v47 = vmul.f32 0.015625, %v1037_v45  ;;  %v941_v44 = vld [vmem:[#allocation20 + $0xd8] sm:$0xff] }
 0xadb   :  { %v3092_v45 = vpack.c.bf16 %v941_v44, %v940_v42 }
 0xadc   :  { %v1039_v48 = vadd.f32 1e-05, %v1038_v47  ;;  %v924_v47 = vld [vmem:[#allocation20 + $0x50] sm:$0xff] }
 0xade   :  { %2267 = vrsqrt.f32 %v1039_v48  ;;  %v925_v48 = vld [vmem:[#allocation20 + $0x58] sm:$0xff] }
 0xae4   :  { %v2266_v51 = vpop.eup %2265 }
 0xae5   :  { %v783_v54 = vmul.f32 %v2266_v51, %v775_v60  ;;  %v3094_v51 = vpack.c.bf16 %v925_v48, %v924_v47 }
 0xae7   :  { %v790_v56 = vmul.f32 %v3041_v52, %v783_v54  ;;  %v942_v54 = vld [vmem:[#allocation20 + $0xe0] sm:$0xff] }
 0xae8   :  { %v2268_v9 = vpop.eup %2267 }
 0xae9   :  { %v797_v57 = vadd.f32 %v3043_v55, %v790_v56  ;;  %v1041_v58 = vmul.f32 %v2268_v9, %v1033_v59  ;;  %v915_v59 = vld [vmem:[#allocation20 + $0x8] sm:$0xff]  ;;  %v926_v9 = vld [vmem:[#allocation20 + $0x60] sm:$0xff] }
 0xaea   :  { %v943_v56 = vld [vmem:[#allocation20 + $0xe8] sm:$0xff] }
 0xaeb   :  { %1878 = vmatmul.mubr.msk.f32.vlgmr.msra.gmra.mrb[10].mxu1 %vm265_vm1, %v797_v57  ;;  %v1048_v60 = vmul.f32 %v2938_v36, %v1041_v58  ;;  %v933_v36 = vld [vmem:[#allocation20 + $0x98] sm:$0xff]  ;;  %v3098_v57 = vpack.c.bf16 %v943_v56, %v942_v54  ;;  %v927_v58 = vld [vmem:[#allocation20 + $0x68] sm:$0xff] }
 0xaec   :  { %2158 = vmatpush1.bf16.msra.mxu1 %v2914_v12  ;;  %1151 = vmatprep.mubr.f32.mxu1 %v2636_v20 }
 0xaed   :  { %2160 = vmatprep.subr.bf16.mxu1 %v2917_v16  ;;  %v1055_v12 = vadd.f32 %v2940_v38, %v1048_v60  ;;  %v930_v16 = vld [vmem:[#allocation20 + $0x80] sm:$0xff]  ;;  %v3100_v60 = vpack.c.bf16 %v927_v58, %v926_v9 }
 0xaf0   :  { %2162 = vmatpush1.bf16.msra.mxu1 %v2921_v21  ;;  %v931_v21 = vld [vmem:[#allocation20 + $0x88] sm:$0xff] }
 0xaf1   :  { %2164 = vmatprep.subr.bf16.mxu1 %v2924_v22  ;;  %v3062_v22 = vpack.c.bf16 %v931_v21, %v930_v16  ;;  %v945_v16 = vld [vmem:[#allocation20 + $0xf8] sm:$0xff] }
 0xaf3   :  { %2124 = vmatprep.subr.bf16.mxu0 %v3062_v22 }
 0xaf4   :  { %2166 = vmatpush1.bf16.msra.mxu1 %v2927_v27  ;;  %v914_v27 = vld [vmem:[#allocation20] sm:$0xff] }
 0xaf5   :  { %2168 = vmatprep.subr.bf16.mxu1 %v2930_v28  ;;  %v3064_v28 = vpack.c.bf16 %v915_v59, %v914_v27  ;;  %v928_v27 = vld [vmem:[#allocation20 + $0x70] sm:$0xff]  ;;  %v929_v59 = vld [vmem:[#allocation20 + $0x78] sm:$0xff] }
 0xaf7   :  { %2126 = vmatpush3.bf16.msra.mxu0 %v3064_v28 }
 0xaf8   :  { %2170 = vmatpush1.bf16.msra.mxu1 %v2933_v31  ;;  %v932_v31 = vld [vmem:[#allocation20 + $0x90] sm:$0xff] }
 0xaf9   :  { %2040 = vmatprep.subr.mxu1 %v2636_v20  ;;  %v3068_v38 = vpack.c.bf16 %v933_v36, %v932_v31  ;;  %v3106_v31 = vpack.c.bf16 %v929_v59, %v928_v27  ;;  %v814_v36 = vld [vmem:[#allocation19] sm:$0x3] }
 0xafa   :  { %v819_v61 = vrot.slane %v814_v36, %v2949_v43  ;;  %v823_v62 = vrot.slane %v814_v36, %v2954_v49 }
 0xafb   :  { %1882 = vmatmul.mubr.msk.f32.vlgmr.msra.gmra.mrb[12].mxu1 %vm265_vm1, %v1055_v12  ;;  %2128 = vmatprep.subr.bf16.mxu0 %v3068_v38  ;;  %v944_v12 = vld [vmem:[#allocation20 + $0xf0] sm:$0xff] }
 0xafc   :  { %2042 = vmatprep.mubr.msk.f32.mxu1 %vm2637_vm2, %v2636_v20  ;;  %2130 = vmatpush3.bf16.msra.mxu0 %v3070_v0  ;;  %v3104_v21 = vpack.c.bf16 %v945_v16, %v944_v12 }
 0xafd   :  { %2132 = vmatprep.subr.bf16.mxu0 %v3074_v2 }
 0xb00   :  { %2134 = vmatpush3.bf16.msra.mxu0 %v3076_v7 }
 0xb01   :  { %2136 = vmatprep.subr.bf16.mxu0 %v3080_v13 }
 0xb04   :  { %2138 = vmatpush3.bf16.msra.mxu0 %v3082_v19 }
 0xb05   :  { %2140 = vmatprep.subr.bf16.mxu0 %v3086_v30 }
 0xb08   :  { %2142 = vmatpush3.bf16.msra.mxu0 %v3088_v41 }
 0xb09   :  { %2144 = vmatprep.subr.bf16.mxu0 %v3092_v45 }
 0xb0c   :  { %2146 = vmatpush3.bf16.msra.mxu0 %v3094_v51 }
 0xb0d   :  { %2148 = vmatprep.subr.bf16.mxu0 %v3098_v57 }
 0xb10   :  { %2150 = vmatpush3.bf16.msra.mxu0 %v3100_v60 }
 0xb11   :  { %2152 = vmatprep.subr.bf16.mxu0 %v3104_v21 }
 0xb14   :  { %2154 = vmatpush3.bf16.msra.mxu0 %v3106_v31 }
 0xb15   :  { %2171 = vmatprep.subr.bf16.mxu0 %v2641_v26 }
 0xbbe   :  { %v895_v63 = vpop.f32.mrb[10].mxu1 }
 0xbbf   :  { %v896_v1 = vadd.f32 %v895_v63, %v819_v61  ;;  %v897_v4 = vpop.f32.mrb[11].mxu1 }
 0xbc0   :  { %v898_v5 = vadd.f32 %v897_v4, %v823_v62 }
 0xbc1   :  { %v900_v8 = vmul.f32 -1.702, %v896_v1 }
 0xbc2   :  { %v901_v11 = vmul.f32 -1.702, %v898_v5 }
 0xbc3   :  { %v902_v15 = vmul.f32 1.442695, %v900_v8 }
 0xbc4   :  { %v904_v17 = vmul.f32 1.442695, %v901_v11 }
 0xbc5   :  { %2269 = vpow2.f32 %v902_v15 }
 0xbc6   :  { %2271 = vpow2.f32 %v904_v17 }
 0xbce   :  { %v1153_v37 = vpop.f32.mrb[12].mxu1 }
 0xbcf   :  { %v2270_v42 = vpop.eup %2269  ;;  %v1154_v44 = vadd.f32 %v1153_v37, %v1077_v25  ;;  %v1155_v47 = vpop.f32.mrb[13].mxu1 }
 0xbd0   :  { %v2272_v48 = vpop.eup %2271  ;;  %v906_v54 = vadd.f32 1.0, %v2270_v42  ;;  %v3115_v56 = vadd.f32 %v1155_v47, %v1081_v34 }
 0xbd1   :  { %v907_v9 = vadd.f32 1.0, %v2272_v48  ;;  %1159 = vrot.lane.b32.xlu0 %v1154_v44, %s2639_s6 }
 0xbd2   :  { %2273 = vrcp.f32 %v906_v54 }
 0xbd3   :  { %2275 = vrcp.f32 %v907_v9 }
 0xbdc   :  { %v2274_v58 = vpop.eup %2273 }
 0xbdd   :  { %v2276_v12 = vpop.eup %2275  ;;  %v912_v27 = vmul.f32 %v2274_v58, %v896_v1 }
 0xbde   :  { %v913_v16 = vmul.f32 %v2276_v12, %v898_v5 }
 0xbe0   :  { %1017 = vmatprep.mubr.f32.mxu0 %v913_v16 }
 0xbe1   :  { %1018 = vmatmul.mubr.f32.vlgmr.msra.gmra.mrb[2].mxu0 %v912_v27 }
 0xbe2   :  { %2173 = vmatpush3.bf16.msra.mxu0 %v2982_v29  ;;  %2076 = vmatprep.mubr.msk.f32.mxu0 %vm2637_vm2, %v2636_v20  ;;  %v3136_v29 = vld [vmem:[#allocation22] ss:$0 sm:$0xff] }
 0xbe3   :  { %2174 = vmatprep.subr.bf16.mxu0 %v2641_v26 }
 0xbe6   :  { %2176 = vmatpush3.bf16.msra.mxu0 %v2985_v32 }
 0xbe7   :  { %2177 = vmatprep.subr.bf16.mxu0 %v2641_v26 }
 0xbea   :  { %2179 = vmatpush3.bf16.msra.mxu0 %v2989_v35 }
 0xbeb   :  { %2180 = vmatprep.subr.bf16.mxu0 %v2641_v26 }
 0xbee   :  { %2182 = vmatpush3.bf16.msra.mxu0 %v2993_v40 }
 0xbef   :  { %2200 = vmatprep.subr.bf16.mxu0 %v3062_v22 }
 0xc43   :  { %v1160_v59 = vpop.permute.xlu0 %1159 }
 0xc44   :  { %2041 = vmatpush3.xpose.msk.msra.mxu1 %vm343_vm3, %v1160_v59 }
 0xc45   :  { %2045 = vmatprep.subr.mxu1 %v2636_v20 }
 0xc47   :  { %2043 = vmatmul.mubr.msk.f32.vlgmr.msra.gmra.mrb[14].mxu1 %vm343_vm3, %v1154_v44 }
 0xc48   :  { %2046 = vmatpush3.msk.msra.mxu1 %vm434_vm4, %v3115_v56  ;;  %2047 = vmatprep.mubr.msk.f32.mxu1 %vm2637_vm2, %v2636_v20 }
 0xc49   :  { %2050 = vmatprep.subr.mxu1 %v2636_v20 }
 0xcb4   :  { %v1946_v26 = vpop.f32.mrb[2].mxu0 }
 0xcb5   :  { %v1947_v32 = vpop.f32.mrb[3].mxu0 }
 0xcb6   :  { %v1948_v35 = vadd.f32 %v1947_v32, %v1946_v26 }
 0xcb8   :  { %v1020_v40 = vadd.f32 %v1948_v35, %v3136_v29 }
 0xcba   :  { %v1023_v22 = vadd.f32 %v1020_v40, %v3008_v53 }
 0xcbc   :  { %1024 = vst.msk [vmem:[#allocation23] sm:$0x1f] %vm208_vm0, %v1023_v22 }
 0xd1a   :  { %v1231_v36 = vpop.f32.mrb[14].mxu1 }
 0xd1b   :  { %v2044_v61 = vpop.f32.mrb[15].mxu1  ;;  %v1235_v62 = vsel %vm418_vm5, %v1231_v36, -inf }
 0xd1c   :  { %1236 = vmax.xlane.f32.xlu1 %v1235_v62 }
 0xd2d   :  { %1324 = vrot.lane.b32.xlu1 %v1154_v44, %s2638_s12 }
 0xd31   :  { %1322 = vrot.lane.b32.xlu1 %v1154_v44, %s2640_s21 }
 0xda9   :  { %v1237_v63 = vpop.xlane.xlu1 %1236 }
 0xdaa   :  { %v1238_v1 = vsub.f32 %v1231_v36, %v1237_v63 }
 0xdac   :  { %v1239_v4 = vmul.f32 1.442695, %v1238_v1 }
 0xdad   :  { %v1325_v15 = vpop.permute.xlu1 %1324 }
 0xdae   :  { %2277 = vpow2.f32 %v1239_v4 }
 0xdb1   :  { %v1323_v23 = vpop.permute.xlu1 %1322 }
 0xdb8   :  { %v2278_v5 = vpop.eup %2277 }
 0xdb9   :  { %v1241_v8 = vsel %vm418_vm5, %v2278_v5, 0.0 }
 0xdba   :  { %1242 = vadd.xlane.f32.xlu0 %v1241_v8 }
 0xe47   :  { %v1243_v53 = vpop.xlane.xlu0 %1242 }
 0xe48   :  { %2279 = vrcp.f32 %v1243_v53 }
 0xe52   :  { %v2280_v11 = vpop.eup %2279 }
 0xe53   :  { %v1245_v17 = vmul.f32 %v2280_v11, %v2278_v5 }
 0xe55   :  { %2048 = vmatmul.mubr.msk.f32.vlgmr.msra.gmra.mrb[16].mxu1 %vm430_vm6, %v1245_v17 }
 0xe56   :  { %2051 = vmatpush3.xpose.msk.msra.mxu1 %vm343_vm3, %v1325_v15  ;;  %2052 = vmatprep.mubr.msk.f32.mxu1 %vm2637_vm2, %v2636_v20 }
 0xe57   :  { %2055 = vmatprep.subr.mxu1 %v2636_v20 }
 0xe59   :  { %2053 = vmatmul.mubr.msk.f32.vlgmr.msra.gmra.mrb[18].mxu1 %vm343_vm3, %v1323_v23 }
 0xe5a   :  { %2057 = vmatprep.mubr.msk.f32.mxu1 %vm2637_vm2, %v2636_v20 }
 0xf28   :  { %v1318_v25 = vpop.f32.mrb[16].mxu1 }
 0xf29   :  { %v2049_v34 = vpop.f32.mrb[17].mxu1 }
 0xf2c   :  { %v1396_v37 = vpop.f32.mrb[18].mxu1 }
 0xf2d   :  { %v2054_v42 = vpop.f32.mrb[19].mxu1  ;;  %v1400_v44 = vsel %vm418_vm5, %v1396_v37, -inf }
 0xf2e   :  { %1401 = vmax.xlane.f32.xlu1 %v1400_v44 }
 0xfbb   :  { %v1402_v47 = vpop.xlane.xlu1 %1401 }
 0xfbc   :  { %v1403_v48 = vsub.f32 %v1396_v37, %v1402_v47 }
 0xfbe   :  { %v1404_v54 = vmul.f32 1.442695, %v1403_v48 }
 0xfc0   :  { %2281 = vpow2.f32 %v1404_v54 }
 0xfca   :  { %v2282_v9 = vpop.eup %2281 }
 0xfcb   :  { %v1406_v58 = vsel %vm418_vm5, %v2282_v9, 0.0 }
 0xfcc   :  { %1407 = vadd.xlane.f32.xlu0 %v1406_v58 }
 0xfe2   :  { %1411 = vrot.lane.b32.xlu0 %v3115_v56, %s2640_s21 }
0x1059   :  { %v1408_v12 = vpop.xlane.xlu0 %1407 }
0x105a   :  { %2283 = vrcp.f32 %v1408_v12 }
0x105d   :  { %v1412_v16 = vpop.permute.xlu0 %1411 }
0x105e   :  { %2056 = vmatpush3.msk.msra.mxu1 %vm434_vm4, %v1412_v16 }
0x105f   :  { %2184 = vmatprep.subr.bf16.mxu1 %v3016_v3 }
0x1064   :  { %v2284_v27 = vpop.eup %2283 }
0x1065   :  { %v1410_v59 = vmul.f32 %v2284_v27, %v2282_v9 }
0x1067   :  { %2058 = vmatmul.mubr.msk.f32.vlgmr.msra.gmra.mrb[20].mxu1 %vm430_vm6, %v1410_v59 }
0x1068   :  { %2186 = vmatpush1.bf16.msra.mxu1 %v3018_v6  ;;  %1707 = vmatprep.mubr.f32.mxu1 %v2636_v20 }
0x1069   :  { %2188 = vmatprep.subr.bf16.mxu1 %v3022_v10 }
0x106c   :  { %2190 = vmatpush1.bf16.msra.mxu1 %v3024_v14 }
0x106d   :  { %2192 = vmatprep.subr.bf16.mxu1 %v3028_v18 }
0x1070   :  { %2194 = vmatpush1.bf16.msra.mxu1 %v3030_v24 }
0x1071   :  { %2196 = vmatprep.subr.bf16.mxu1 %v3034_v33 }
0x1074   :  { %2198 = vmatpush1.bf16.msra.mxu1 %v3036_v39 }
0x113a   :  { %v1484_v3 = vpop.f32.mrb[20].mxu1 }
0x113b   :  { %1489 = vrot.lane.b32.xlu0 %v1484_v3, %s2638_s12  ;;  %v2059_v56 = vpop.f32.mrb[21].mxu1 }
0x11ad   :  { %v1490_v26 = vpop.permute.xlu0 %1489 }
0x11ae   :  { %v1492_v6 = vsel %vm343_vm3, %v1318_v25, %v1490_v26 }
0x11af   :  { %2077 = vmatmul.mubr.msk.f32.vlgmr.msra.gmra.mrb[4].mxu0 %vm265_vm1, %v1492_v6 }
0x11b0   :  { %2202 = vmatpush3.bf16.msra.mxu0 %v3064_v28 }
0x11b1   :  { %2204 = vmatprep.subr.bf16.mxu0 %v3068_v38 }
0x11b4   :  { %2206 = vmatpush3.bf16.msra.mxu0 %v3070_v0 }
0x11b5   :  { %2208 = vmatprep.subr.bf16.mxu0 %v3074_v2 }
0x11b8   :  { %2210 = vmatpush3.bf16.msra.mxu0 %v3076_v7 }
0x11b9   :  { %2212 = vmatprep.subr.bf16.mxu0 %v3080_v13 }
0x11bc   :  { %2214 = vmatpush3.bf16.msra.mxu0 %v3082_v19 }
0x11bd   :  { %2216 = vmatprep.subr.bf16.mxu0 %v3086_v30 }
0x11c0   :  { %2218 = vmatpush3.bf16.msra.mxu0 %v3088_v41  ;;  %v1628_v41 = vld [vmem:[#allocation19] sm:$0x3] }
0x11c1   :  { %2220 = vmatprep.subr.bf16.mxu0 %v3092_v45  ;;  %v1633_v45 = vrot.slane %v1628_v41, %v2949_v43 }
0x11c4   :  { %2222 = vmatpush3.bf16.msra.mxu0 %v3094_v51  ;;  %v1637_v51 = vrot.slane %v1628_v41, %v2954_v49 }
0x11c5   :  { %2224 = vmatprep.subr.bf16.mxu0 %v3098_v57 }
0x11c8   :  { %2226 = vmatpush3.bf16.msra.mxu0 %v3100_v60 }
0x11c9   :  { %2228 = vmatprep.subr.bf16.mxu0 %v3104_v21 }
0x11cc   :  { %2230 = vmatpush3.bf16.msra.mxu0 %v3106_v31 }
0x1282   :  { %v1570_v20 = vpop.f32.mrb[4].mxu0 }
0x1283   :  { %v1574_v10 = vadd.f32 %v1570_v20, %v3000_v46  ;;  %v2078_v14 = vpop.f32.mrb[5].mxu0 }
0x1285   :  { %v1582_v18 = vadd.f32 %v3004_v50, %v1574_v10 }
0x1287   :  { %v1585_v24 = vsel %vm208_vm0, %v1582_v18, 0.0 }
0x1288   :  { %1586 = vadd.xlane.f32.xlu1 %v1585_v24 }
0x1315   :  { %v1587_v33 = vpop.xlane.xlu1 %1586 }
0x1316   :  { %v1588_v39 = vmul.f32 0.015625, %v1587_v33 }
0x1318   :  { %v1589_v28 = vsub.f32 %v1582_v18, %v1588_v39 }
0x131a   :  { %v1590_v38 = vmul.f32 %v1589_v28, %v1589_v28 }
0x131c   :  { %v1591_v0 = vsel %vm208_vm0, %v1590_v38, 0.0 }
0x131d   :  { %1592 = vadd.xlane.f32.xlu0 %v1591_v0 }
0x13aa   :  { %v1593_v2 = vpop.xlane.xlu0 %1592 }
0x13ab   :  { %v1594_v7 = vmul.f32 0.015625, %v1593_v2 }
0x13ad   :  { %v1595_v13 = vadd.f32 1e-05, %v1594_v7 }
0x13af   :  { %2285 = vrsqrt.f32 %v1595_v13 }
0x13b9   :  { %v2286_v19 = vpop.eup %2285 }
0x13ba   :  { %v1597_v30 = vmul.f32 %v2286_v19, %v1589_v28 }
0x13bc   :  { %v1604_v46 = vmul.f32 %v3041_v52, %v1597_v30 }
0x13be   :  { %v1611_v50 = vadd.f32 %v3043_v55, %v1604_v46 }
0x13c0   :  { %1895 = vmatmul.mubr.msk.f32.vlgmr.msra.gmra.mrb[22].mxu1 %vm265_vm1, %v1611_v50 }
0x1493   :  { %v1709_v57 = vpop.f32.mrb[22].mxu1 }
0x1494   :  { %v1710_v60 = vadd.f32 %v1709_v57, %v1633_v45  ;;  %v1711_v21 = vpop.f32.mrb[23].mxu1 }
0x1495   :  { %v1712_v31 = vadd.f32 %v1711_v21, %v1637_v51 }
0x1496   :  { %v1714_v32 = vmul.f32 -1.702, %v1710_v60 }
0x1497   :  { %v1715_v35 = vmul.f32 -1.702, %v1712_v31 }
0x1498   :  { %v1716_v40 = vmul.f32 1.442695, %v1714_v32 }
0x1499   :  { %v1718_v22 = vmul.f32 1.442695, %v1715_v35 }
0x149a   :  { %2287 = vpow2.f32 %v1716_v40 }
0x149b   :  { %2289 = vpow2.f32 %v1718_v22 }
0x14a4   :  { %v2288_v52 = vpop.eup %2287 }
0x14a5   :  { %v2290_v36 = vpop.eup %2289  ;;  %v1720_v55 = vadd.f32 1.0, %v2288_v52 }
0x14a6   :  { %v1721_v61 = vadd.f32 1.0, %v2290_v36 }
0x14a7   :  { %2291 = vrcp.f32 %v1720_v55 }
0x14a8   :  { %2293 = vrcp.f32 %v1721_v61 }
0x14b1   :  { %v2292_v62 = vpop.eup %2291 }
0x14b2   :  { %v2294_v43 = vpop.eup %2293  ;;  %v1726_v49 = vmul.f32 %v2292_v62, %v1710_v60 }
0x14b3   :  { %v1727_v63 = vmul.f32 %v2294_v43, %v1712_v31 }
0x14b5   :  { %1831 = vmatprep.mubr.f32.mxu0 %v1727_v63 }
0x14b6   :  { %1832 = vmatmul.mubr.f32.vlgmr.msra.gmra.mrb[6].mxu0 %v1726_v49 }
0x1589   :  { %v1998_v1 = vpop.f32.mrb[6].mxu0 }
0x158a   :  { %v1999_v4 = vpop.f32.mrb[7].mxu0 }
0x158b   :  { %v2000_v5 = vadd.f32 %v1999_v4, %v1998_v1 }
0x158d   :  { %v1834_v8 = vadd.f32 %v2000_v5, %v3136_v29 }
0x158f   :  { %v1837_v53 = vadd.f32 %v1834_v8, %v1582_v18 }
0x1591   :  { %1839 = vst.msk [vmem:[#allocation23 + $0x8] sm:$0x1f] %vm208_vm0, %v1837_v53 }
0x1592   :  { %2592 = shalt.err (!%p2589_p10)
}
0x1593   :  { %s2593_s1 = scalar_lea.hbm %s3225_s13, 256 }
0x1594   :  { %p2594_p11 = scmp.ne.s32.totalorder %s3225_s13, %s2593_s1  ;;  %p2597_p12 = scmp.lt.u32.totalorder %s2593_s1, %s3225_s13 }
0x1596   :  { %p2599_p13 = pnand %p2597_p12, %p2594_p11 }
0x1598   :  { %2602 = shalt.err (!%p2599_p13)
}
0x1599   :  { %1851 = dma.vmem_to_hbm [thread:$0]  %s1846_s17, 256, %s3225_s13, [#allocation4], %s2625_s28, %s2625_s28, %s2626_s14  }
0x159a   :  { %2617 = dma.done.wait [#allocation4], 256  }
0x159b   :  { %2618 = vsyncadd [#allocation4], 4294967040 }
0x159c   :  { %1855 = vsyncpa [#allocation3], 1 }
0x159d   :  { %1856 = vsyncpa [#allocation6], 1 }
0x159e   :  { %1857 = vsyncpa [#allocation9], 1 }
0x159f   :  { %1858 = vsyncpa [#allocation12], 1 }
0x15a0   :  { %1859 = vsyncpa [#allocation15], 1 }
0x15a1   :  { %1860 = vsyncpa [#allocation18], 1 }
0x15a2   :  { %1861 = vsyncpa [#allocation21], 1 }
0x15a3   :  { %1862 = vsyncpa [#allocation4], 1 }

</bundles_post_ra>
